<compile_context>
chip_gen: v7x
topology: tpu7x:2x2x1
jax: 0.10.0
libtpu: 0.0.40
codegen_flags: <defaults>
</compile_context>

<pallas_src>
import math
import numpy as np
import jax
import jax.numpy as jnp
from jax import lax
from jax.experimental import pallas as pl
from jax.experimental.pallas import tpu as pltpu

SQRT_HALF = math.sqrt(0.5)


def position_encoding_init(n_position, d_pos_vec, position_rate=1.0):
    """Same sinusoid table as the PyTorch helper (numpy, deterministic)."""
    position_enc = np.array(
        [[position_rate * pos / np.power(10000, 2 * i / d_pos_vec) for i in range(d_pos_vec)]
         if pos != 0 else np.zeros(d_pos_vec)
         for pos in range(n_position)])
    position_enc[1:, 0::2] = np.sin(position_enc[1:, 0::2])
    position_enc[1:, 1::2] = np.cos(position_enc[1:, 1::2])
    return position_enc.astype(np.float32)


def make_encoder_kernel(bb, T, E, C, L, K):
    """Kernel processing `bb` whole batch items (bb*T rows) per grid step."""
    pad = (K - 1) // 2
    rows = bb * T

    def kernel(emb_ref, fc1_w_ref, fc1_b_ref, conv_w_ref, conv_b_ref,
               fc2_w_ref, fc2_b_ref, out_ref):
        x2d = emb_ref[...]                                       # (rows, E) f32

        # fc1: bf16 operands on the MXU, f32 accumulate + f32 bias epilogue.
        h = jnp.dot(x2d.astype(jnp.bfloat16), fc1_w_ref[...],
                    preferred_element_type=jnp.float32) + fc1_b_ref[...]   # (rows, C) f32

        # Per-tap validity masks: shifted time index must stay in [0, T).
        # (rows, 1) planes broadcast in jnp.where; hoisted out of the layer
        # loop (JAX does not CSE broadcast_in_dim).
        row_t = lax.broadcasted_iota(jnp.int32, (rows, 1), 0) % T
        valid = []
        for k in range(K):
            s = k - pad
            if s == 0:
                valid.append(None)
            else:
                tt = row_t + s
                valid.append((tt >= 0) & (tt < T))

        # Conv stack: each ConvTBC layer is ONE im2col matmul on the MXU.
        for l in range(L):
            taps = []
            for k in range(K):
                s = k - pad                                      # time offset of this tap
                if s == 0:
                    taps.append(h.astype(jnp.bfloat16))
                else:
                    # rolled[r, :] == h[(r + s) mod rows, :]; out-of-range /
                    # cross-batch rows are zeroed by the mask (== zero pad).
                    rolled = pltpu.roll(h, shift=(-s) % rows, axis=0)
                    taps.append(jnp.where(valid[k], rolled, 0.0).astype(jnp.bfloat16))
            cols = jnp.concatenate(taps, axis=-1)                # (rows, K*C) bf16
            acc = jnp.dot(cols, conv_w_ref[l],
                          preferred_element_type=jnp.float32) + conv_b_ref[l]   # (rows, 2C) f32
            glu = acc[:, :C] * jax.nn.sigmoid(acc[:, C:])        # GLU: a * sigmoid(b)
            h = (glu + h) * SQRT_HALF                            # residual (projections are None)

        # fc2 + values fused: fc2_w_ref is [fc2_w | sqrt(0.5)*fc2_w] (C, 2E),
        # so kv[:, :E] = keys, kv[:, E:] = sqrt(0.5)*keys.  values only need
        # the sqrt(0.5)*x2d addend; output stays lane-packed keys||values.
        kv = jnp.dot(h.astype(jnp.bfloat16), fc2_w_ref[...],
                     preferred_element_type=jnp.float32) + fc2_b_ref[...]       # (rows, 2E)
        addend = jnp.concatenate([jnp.zeros_like(x2d), SQRT_HALF * x2d], axis=-1)
        out_ref[...] = kv + addend

    return kernel


def _default_num_batch_blocks(B, T):
    """1 on single-TensorCore chips (v5e/v6e); 2 on v7x only if each parallel
    step still gets >= 256 rows to fill the 256-wide MXU M side."""
    try:
        kind = jax.devices()[0].device_kind.lower()
    except Exception:
        kind = ""
    if "v7" in kind and B % 2 == 0 and (B // 2) * T >= 256:
        return 2
    return 1


def encoder_forward(emb, fc1_w, fc1_b, conv_w, conv_b, fc2_w, fc2_b,
                    num_batch_blocks=None):
    B, T, E = emb.shape
    L, K, C, C2 = conv_w.shape
    assert C2 == 2 * C
    assert K % 2 == 1, "symmetric ConvTBC padding assumes odd kernel size"

    if num_batch_blocks is None:
        num_batch_blocks = _default_num_batch_blocks(B, T)
    assert B % num_batch_blocks == 0
    bb = B // num_batch_blocks
    rows = bb * T
    assert rows % 8 == 0, "rows per grid step must be sublane (8) aligned"

    # Host-side layout plumbing so the kernel needs no transposes/reshapes.
    # Matmul operands (weights) go to bf16; biases stay f32.
    emb2d = emb.reshape(B * T, E)
    fc1_w_bf = fc1_w.astype(jnp.bfloat16)
    conv_w_flat = conv_w.reshape(L, K * C, 2 * C).astype(jnp.bfloat16)  # k-major, im2col order
    conv_b3 = conv_b.reshape(L, 1, 2 * C)
    fc2_w_packed = jnp.concatenate([fc2_w, SQRT_HALF * fc2_w], axis=1).astype(jnp.bfloat16)
    fc2_b_packed = jnp.concatenate([fc2_b, SQRT_HALF * fc2_b], axis=1)  # (1, 2E) f32

    kernel = make_encoder_kernel(bb, T, E, C, L, K)

    out = pl.pallas_call(
        kernel,
        out_shape=jax.ShapeDtypeStruct((B * T, 2 * E), jnp.float32),
        grid=(num_batch_blocks,),
        in_specs=[
            pl.BlockSpec((rows, E), lambda i: (i, 0)),                 # embeddings (batch chunk)
            pl.BlockSpec((E, C), lambda i: (0, 0)),                    # fc1 weight (bf16)
            pl.BlockSpec((1, C), lambda i: (0, 0)),                    # fc1 bias (f32)
            pl.BlockSpec((L, K * C, 2 * C), lambda i: (0, 0, 0)),      # conv weights (im2col, bf16)
            pl.BlockSpec((L, 1, 2 * C), lambda i: (0, 0, 0)),          # conv biases (f32)
            pl.BlockSpec((C, 2 * E), lambda i: (0, 0)),                # fc2 weight packed (bf16)
            pl.BlockSpec((1, 2 * E), lambda i: (0, 0)),                # fc2 bias packed (f32)
        ],
        out_specs=pl.BlockSpec((rows, 2 * E), lambda i: (i, 0)),       # keys||values packed
        compiler_params=pltpu.CompilerParams(
            dimension_semantics=("parallel",),
            # Headroom for production T/C where the bf16 im2col operand plus
            # activations can exceed the 16/32 MiB scoped-VMEM default.
            vmem_limit_bytes=64 * 1024 * 1024),
    )(emb2d, fc1_w_bf, fc1_b, conv_w_flat, conv_b3, fc2_w_packed, fc2_b_packed)

    out = out.reshape(B, T, 2 * E)
    # TODO(synk): callers that can consume the packed (B, T, 2E) slab directly
    # should do so and skip these two host-side slice copies.
    keys = out[..., :E]
    values = out[..., E:]
    return keys, values


def reference_forward(emb, fc1_w, fc1_b, conv_w, conv_b, fc2_w, fc2_b):
    """Pure-JAX f32 reference mirroring the PyTorch forward (eval mode)."""
    B, T, E = emb.shape
    L, K, C, _ = conv_w.shape
    pad = (K - 1) // 2
    h = jnp.einsum('bte,ec->btc', emb, fc1_w, precision='highest') + fc1_b
    for l in range(L):
        residual = h
        hp = jnp.pad(h, ((0, 0), (pad, pad), (0, 0)))
        acc = jnp.broadcast_to(conv_b[l], (B, T, 2 * C))
        for k in range(K):
            acc = acc + jnp.einsum('btc,cd->btd', hp[:, k:k + T, :], conv_w[l, k],
                                   precision='highest')
        a, b = acc[..., :C], acc[..., C:]
        h = (a * jax.nn.sigmoid(b) + residual) * SQRT_HALF
    keys = jnp.einsum('btc,ce->bte', h, fc2_w, precision='highest') + fc2_b
    values = (keys + emb) * SQRT_HALF
    return keys, values


if __name__ == "__main__":
    # small, module-consistent config
    n_vocab = 32
    embed_dim = 32          # E
    max_positions = 32
    dropout = 0.1
    convolutions = ((64, 5, 1),) * 3   # (out_channels, kernel_size, dilation=1)
    B, T = 4, 16
    C = convolutions[0][0]
    K = convolutions[0][1]
    L = len(convolutions)

    key = jax.random.PRNGKey(0)
    k_tok, k_fc1, k_fc1b, k_conv, k_convb, k_fc2, k_fc2b, k_seq = jax.random.split(key, 8)

    # --- parameters (deterministic synthetic init matching the module's init
    #     scheme; small non-zero biases exercise the bias paths) ---
    embed_tokens = (0.1 * jax.random.normal(k_tok, (n_vocab, embed_dim))).astype(jnp.float32)
    embed_positions = jnp.asarray(position_encoding_init(max_positions, embed_dim))

    fc1_std = math.sqrt((1.0 - dropout) / embed_dim)
    fc1_w = (fc1_std * jax.random.normal(k_fc1, (embed_dim, C))).astype(jnp.float32)
    fc1_b = (0.01 * jax.random.normal(k_fc1b, (1, C))).astype(jnp.float32)

    conv_std = math.sqrt(4.0 * (1.0 - dropout) / (K * C))
    conv_w = (conv_std * jax.random.normal(k_conv, (L, K, C, 2 * C))).astype(jnp.float32)
    conv_b = (0.01 * jax.random.normal(k_convb, (L, 2 * C))).astype(jnp.float32)

    fc2_std = math.sqrt(1.0 / C)
    fc2_w = (fc2_std * jax.random.normal(k_fc2, (C, embed_dim))).astype(jnp.float32)
    fc2_b = (0.01 * jax.random.normal(k_fc2b, (1, embed_dim))).astype(jnp.float32)

    # --- inputs ---
    text_sequences = jax.random.randint(k_seq, (B, T), 1, n_vocab)       # int token ids
    text_positions = jnp.broadcast_to(jnp.arange(1, T + 1), (B, T))      # 1-based positions

    # embedding lookups (gather) stay in glue; the hot path runs in the kernel
    emb = (embed_tokens[text_sequences] + embed_positions[text_positions]).astype(jnp.float32)
    # TODO(synk): speaker-embedding branch (softsign projections) skipped since n_speakers == 1.

    keys, values = encoder_forward(emb, fc1_w, fc1_b, conv_w, conv_b, fc2_w, fc2_b)
    keys = jax.block_until_ready(keys)
    values = jax.block_until_ready(values)

    ref_keys, ref_values = reference_forward(emb, fc1_w, fc1_b, conv_w, conv_b, fc2_w, fc2_b)
    # Tolerance covers bf16 MXU operands vs. the f32 'highest' reference.
    np.testing.assert_allclose(np.asarray(keys), np.asarray(ref_keys), rtol=2e-2, atol=2e-2)
    np.testing.assert_allclose(np.asarray(values), np.asarray(ref_values), rtol=2e-2, atol=2e-2)

    print("KERNEL_OK")
</pallas_src>

<mosaic_0001>
module attributes {stable_mosaic.version = 11 : i64} {
  func.func @kernel(%arg0: i32, %arg1: memref<64x32xf32, #tpu.memory_space<vmem>>, %arg2: memref<32x64xbf16, #tpu.memory_space<vmem>>, %arg3: memref<1x64xf32, #tpu.memory_space<vmem>>, %arg4: memref<3x320x128xbf16, #tpu.memory_space<vmem>>, %arg5: memref<3x1x128xf32, #tpu.memory_space<vmem>>, %arg6: memref<64x64xbf16, #tpu.memory_space<vmem>>, %arg7: memref<1x64xf32, #tpu.memory_space<vmem>>, %arg8: memref<64x64xf32, #tpu.memory_space<vmem>>) attributes {dimension_semantics = [#tpu.dimension_semantics<parallel>], iteration_bounds = array<i64: 1>, scalar_prefetch = 0 : i64, scratch_operands = 0 : i64, tpu.core_type = #tpu.core_type<tc>, window_params = [{transform_indices = @transform_0, window_bounds = array<i64: 64, 32>}, {pipeline_mode = #tpu.pipeline_mode<synchronous>, transform_indices = @transform_1, window_bounds = array<i64: 32, 64>}, {pipeline_mode = #tpu.pipeline_mode<synchronous>, transform_indices = @transform_2, window_bounds = array<i64: 1, 64>}, {pipeline_mode = #tpu.pipeline_mode<synchronous>, transform_indices = @transform_3, window_bounds = array<i64: 3, 320, 128>}, {pipeline_mode = #tpu.pipeline_mode<synchronous>, transform_indices = @transform_4, window_bounds = array<i64: 3, 1, 128>}, {pipeline_mode = #tpu.pipeline_mode<synchronous>, transform_indices = @transform_5, window_bounds = array<i64: 64, 64>}, {pipeline_mode = #tpu.pipeline_mode<synchronous>, transform_indices = @transform_6, window_bounds = array<i64: 1, 64>}, {transform_indices = @transform_7, window_bounds = array<i64: 64, 64>}]} {
    %c0 = arith.constant 0 : index
    %c0_0 = arith.constant 0 : index
    %0 = vector.load %arg1[%c0, %c0_0] : memref<64x32xf32, #tpu.memory_space<vmem>>, vector<64x32xf32>
    %1 = arith.truncf %0 : vector<64x32xf32> to vector<64x32xbf16>
    %c0_1 = arith.constant 0 : index
    %c0_2 = arith.constant 0 : index
    %2 = vector.load %arg2[%c0_1, %c0_2] : memref<32x64xbf16, #tpu.memory_space<vmem>>, vector<32x64xbf16>
    %cst = arith.constant dense<0.000000e+00> : vector<64x64xf32>
    %3 = tpu.matmul %1, %2, %cst {dimension_numbers = #tpu.dot_dimension_numbers<[1], [0], [0], [1], [0, 0, 1, 1], [], []>} : vector<64x32xbf16>, vector<32x64xbf16>, vector<64x64xf32> -> vector<64x64xf32>
    %c0_3 = arith.constant 0 : index
    %c0_4 = arith.constant 0 : index
    %4 = vector.load %arg3[%c0_3, %c0_4] : memref<1x64xf32, #tpu.memory_space<vmem>>, vector<1x64xf32>
    %5 = vector.broadcast %4 : vector<1x64xf32> to vector<64x64xf32>
    %6 = arith.addf %3, %5 : vector<64x64xf32>
    %7 = tpu.iota {dimensions = array<i32: 0>} : vector<64x1xi32>
    %c16_i32 = arith.constant 16 : i32
    %c0_i32 = arith.constant 0 : i32
    %8 = arith.cmpi eq, %c16_i32, %c0_i32 : i32
    %c1_i32 = arith.constant 1 : i32
    %9 = arith.select %8, %c1_i32, %c16_i32 : i32
    %10 = vector.broadcast %9 : i32 to vector<64x1xi32>
    %11 = arith.remsi %7, %10 : vector<64x1xi32>
    %c0_i32_5 = arith.constant 0 : i32
    %12 = vector.broadcast %c0_i32_5 : i32 to vector<64x1xi32>
    %13 = arith.cmpi ne, %11, %12 : vector<64x1xi32>
    %c0_i32_6 = arith.constant 0 : i32
    %14 = vector.broadcast %c0_i32_6 : i32 to vector<64x1xi32>
    %15 = arith.cmpi slt, %11, %14 : vector<64x1xi32>
    %c0_i32_7 = arith.constant 0 : i32
    %16 = arith.cmpi slt, %9, %c0_i32_7 : i32
    %17 = vector.broadcast %16 : i1 to vector<64x1xi1>
    %18 = vector.broadcast %17 : vector<64x1xi1> to vector<64x1xi1>
    %19 = arith.xori %15, %18 : vector<64x1xi1>
    %20 = arith.andi %19, %13 : vector<64x1xi1>
    %21 = vector.broadcast %9 : i32 to vector<64x1xi32>
    %22 = arith.addi %11, %21 : vector<64x1xi32>
    %23 = arith.select %20, %22, %11 : vector<64x1xi1>, vector<64x1xi32>
    %c-2_i32 = arith.constant -2 : i32
    %24 = vector.broadcast %c-2_i32 : i32 to vector<64x1xi32>
    %25 = arith.addi %23, %24 : vector<64x1xi32>
    %c0_i32_8 = arith.constant 0 : i32
    %26 = vector.broadcast %c0_i32_8 : i32 to vector<64x1xi32>
    %27 = arith.cmpi sge, %25, %26 : vector<64x1xi32>
    %c16_i32_9 = arith.constant 16 : i32
    %28 = vector.broadcast %c16_i32_9 : i32 to vector<64x1xi32>
    %29 = arith.cmpi slt, %25, %28 : vector<64x1xi32>
    %30 = arith.andi %27, %29 : vector<64x1xi1>
    %c-1_i32 = arith.constant -1 : i32
    %31 = vector.broadcast %c-1_i32 : i32 to vector<64x1xi32>
    %32 = arith.addi %23, %31 : vector<64x1xi32>
    %c0_i32_10 = arith.constant 0 : i32
    %33 = vector.broadcast %c0_i32_10 : i32 to vector<64x1xi32>
    %34 = arith.cmpi sge, %32, %33 : vector<64x1xi32>
    %c16_i32_11 = arith.constant 16 : i32
    %35 = vector.broadcast %c16_i32_11 : i32 to vector<64x1xi32>
    %36 = arith.cmpi slt, %32, %35 : vector<64x1xi32>
    %37 = arith.andi %34, %36 : vector<64x1xi1>
    %c1_i32_12 = arith.constant 1 : i32
    %38 = vector.broadcast %c1_i32_12 : i32 to vector<64x1xi32>
    %39 = arith.addi %23, %38 : vector<64x1xi32>
    %c0_i32_13 = arith.constant 0 : i32
    %40 = vector.broadcast %c0_i32_13 : i32 to vector<64x1xi32>
    %41 = arith.cmpi sge, %39, %40 : vector<64x1xi32>
    %c16_i32_14 = arith.constant 16 : i32
    %42 = vector.broadcast %c16_i32_14 : i32 to vector<64x1xi32>
    %43 = arith.cmpi slt, %39, %42 : vector<64x1xi32>
    %44 = arith.andi %41, %43 : vector<64x1xi1>
    %c2_i32 = arith.constant 2 : i32
    %45 = vector.broadcast %c2_i32 : i32 to vector<64x1xi32>
    %46 = arith.addi %23, %45 : vector<64x1xi32>
    %c0_i32_15 = arith.constant 0 : i32
    %47 = vector.broadcast %c0_i32_15 : i32 to vector<64x1xi32>
    %48 = arith.cmpi sge, %46, %47 : vector<64x1xi32>
    %c16_i32_16 = arith.constant 16 : i32
    %49 = vector.broadcast %c16_i32_16 : i32 to vector<64x1xi32>
    %50 = arith.cmpi slt, %46, %49 : vector<64x1xi32>
    %51 = arith.andi %48, %50 : vector<64x1xi1>
    %c2_i32_17 = arith.constant 2 : i32
    %52 = tpu.dynamic_rotate %6 by %c2_i32_17 dim 0 : vector<64x64xf32>, i32 -> vector<64x64xf32>
    %cst_18 = arith.constant 0.000000e+00 : f32
    %53 = vector.shape_cast %30 : vector<64x1xi1> to vector<64x1xi1>
    %54 = vector.broadcast %53 : vector<64x1xi1> to vector<64x64xi1>
    %55 = vector.broadcast %cst_18 : f32 to vector<64x64xf32>
    %56 = arith.select %54, %52, %55 : vector<64x64xi1>, vector<64x64xf32>
    %57 = arith.truncf %56 : vector<64x64xf32> to vector<64x64xbf16>
    %c1_i32_19 = arith.constant 1 : i32
    %58 = tpu.dynamic_rotate %6 by %c1_i32_19 dim 0 : vector<64x64xf32>, i32 -> vector<64x64xf32>
    %cst_20 = arith.constant 0.000000e+00 : f32
    %59 = vector.shape_cast %37 : vector<64x1xi1> to vector<64x1xi1>
    %60 = vector.broadcast %59 : vector<64x1xi1> to vector<64x64xi1>
    %61 = vector.broadcast %cst_20 : f32 to vector<64x64xf32>
    %62 = arith.select %60, %58, %61 : vector<64x64xi1>, vector<64x64xf32>
    %63 = arith.truncf %62 : vector<64x64xf32> to vector<64x64xbf16>
    %64 = arith.truncf %6 : vector<64x64xf32> to vector<64x64xbf16>
    %c63_i32 = arith.constant 63 : i32
    %65 = tpu.dynamic_rotate %6 by %c63_i32 dim 0 : vector<64x64xf32>, i32 -> vector<64x64xf32>
    %cst_21 = arith.constant 0.000000e+00 : f32
    %66 = vector.shape_cast %44 : vector<64x1xi1> to vector<64x1xi1>
    %67 = vector.broadcast %66 : vector<64x1xi1> to vector<64x64xi1>
    %68 = vector.broadcast %cst_21 : f32 to vector<64x64xf32>
    %69 = arith.select %67, %65, %68 : vector<64x64xi1>, vector<64x64xf32>
    %70 = arith.truncf %69 : vector<64x64xf32> to vector<64x64xbf16>
    %c62_i32 = arith.constant 62 : i32
    %71 = tpu.dynamic_rotate %6 by %c62_i32 dim 0 : vector<64x64xf32>, i32 -> vector<64x64xf32>
    %cst_22 = arith.constant 0.000000e+00 : f32
    %72 = vector.shape_cast %51 : vector<64x1xi1> to vector<64x1xi1>
    %73 = vector.broadcast %72 : vector<64x1xi1> to vector<64x64xi1>
    %74 = vector.broadcast %cst_22 : f32 to vector<64x64xf32>
    %75 = arith.select %73, %71, %74 : vector<64x64xi1>, vector<64x64xf32>
    %76 = arith.truncf %75 : vector<64x64xf32> to vector<64x64xbf16>
    %77 = tpu.concatenate %57, %63, %64, %70, %76 in 1 : vector<64x64xbf16>, vector<64x64xbf16>, vector<64x64xbf16>, vector<64x64xbf16>, vector<64x64xbf16> -> vector<64x320xbf16>
    %c0_23 = arith.constant 0 : index
    %c0_24 = arith.constant 0 : index
    %c0_25 = arith.constant 0 : index
    %78 = vector.load %arg4[%c0_23, %c0_24, %c0_25] : memref<3x320x128xbf16, #tpu.memory_space<vmem>>, vector<1x320x128xbf16>
    %79 = vector.shape_cast %78 : vector<1x320x128xbf16> to vector<320x128xbf16>
    %cst_26 = arith.constant dense<0.000000e+00> : vector<64x128xf32>
    %80 = tpu.matmul %77, %79, %cst_26 {dimension_numbers = #tpu.dot_dimension_numbers<[1], [0], [0], [1], [0, 0, 1, 1], [], []>} : vector<64x320xbf16>, vector<320x128xbf16>, vector<64x128xf32> -> vector<64x128xf32>
    %c0_27 = arith.constant 0 : index
    %c0_28 = arith.constant 0 : index
    %c0_29 = arith.constant 0 : index
    %81 = vector.load %arg5[%c0_27, %c0_28, %c0_29] : memref<3x1x128xf32, #tpu.memory_space<vmem>>, vector<1x1x128xf32>
    %82 = vector.shape_cast %81 : vector<1x1x128xf32> to vector<1x128xf32>
    %83 = vector.broadcast %82 : vector<1x128xf32> to vector<64x128xf32>
    %84 = arith.addf %80, %83 : vector<64x128xf32>
    %85 = vector.extract_strided_slice %84 {offsets = [0, 0], sizes = [64, 64], strides = [1, 1]} : vector<64x128xf32> to vector<64x64xf32>
    %86 = vector.extract_strided_slice %84 {offsets = [0, 64], sizes = [64, 64], strides = [1, 1]} : vector<64x128xf32> to vector<64x64xf32>
    %87 = arith.negf %86 : vector<64x64xf32>
    %88 = math.exp %87 : vector<64x64xf32>
    %cst_30 = arith.constant 1.000000e+00 : f32
    %89 = vector.broadcast %cst_30 : f32 to vector<64x64xf32>
    %90 = arith.addf %89, %88 : vector<64x64xf32>
    %91 = arith.divf %89, %90 : vector<64x64xf32>
    %92 = arith.mulf %85, %91 : vector<64x64xf32>
    %93 = arith.addf %92, %6 : vector<64x64xf32>
    %cst_31 = arith.constant 0.707106769 : f32
    %94 = vector.broadcast %cst_31 : f32 to vector<64x64xf32>
    %95 = arith.mulf %93, %94 : vector<64x64xf32>
    %c2_i32_32 = arith.constant 2 : i32
    %96 = tpu.dynamic_rotate %95 by %c2_i32_32 dim 0 : vector<64x64xf32>, i32 -> vector<64x64xf32>
    %cst_33 = arith.constant 0.000000e+00 : f32
    %97 = vector.shape_cast %30 : vector<64x1xi1> to vector<64x1xi1>
    %98 = vector.broadcast %97 : vector<64x1xi1> to vector<64x64xi1>
    %99 = vector.broadcast %cst_33 : f32 to vector<64x64xf32>
    %100 = arith.select %98, %96, %99 : vector<64x64xi1>, vector<64x64xf32>
    %101 = arith.truncf %100 : vector<64x64xf32> to vector<64x64xbf16>
    %c1_i32_34 = arith.constant 1 : i32
    %102 = tpu.dynamic_rotate %95 by %c1_i32_34 dim 0 : vector<64x64xf32>, i32 -> vector<64x64xf32>
    %cst_35 = arith.constant 0.000000e+00 : f32
    %103 = vector.shape_cast %37 : vector<64x1xi1> to vector<64x1xi1>
    %104 = vector.broadcast %103 : vector<64x1xi1> to vector<64x64xi1>
    %105 = vector.broadcast %cst_35 : f32 to vector<64x64xf32>
    %106 = arith.select %104, %102, %105 : vector<64x64xi1>, vector<64x64xf32>
    %107 = arith.truncf %106 : vector<64x64xf32> to vector<64x64xbf16>
    %108 = arith.truncf %95 : vector<64x64xf32> to vector<64x64xbf16>
    %c63_i32_36 = arith.constant 63 : i32
    %109 = tpu.dynamic_rotate %95 by %c63_i32_36 dim 0 : vector<64x64xf32>, i32 -> vector<64x64xf32>
    %cst_37 = arith.constant 0.000000e+00 : f32
    %110 = vector.shape_cast %44 : vector<64x1xi1> to vector<64x1xi1>
    %111 = vector.broadcast %110 : vector<64x1xi1> to vector<64x64xi1>
    %112 = vector.broadcast %cst_37 : f32 to vector<64x64xf32>
    %113 = arith.select %111, %109, %112 : vector<64x64xi1>, vector<64x64xf32>
    %114 = arith.truncf %113 : vector<64x64xf32> to vector<64x64xbf16>
    %c62_i32_38 = arith.constant 62 : i32
    %115 = tpu.dynamic_rotate %95 by %c62_i32_38 dim 0 : vector<64x64xf32>, i32 -> vector<64x64xf32>
    %cst_39 = arith.constant 0.000000e+00 : f32
    %116 = vector.shape_cast %51 : vector<64x1xi1> to vector<64x1xi1>
    %117 = vector.broadcast %116 : vector<64x1xi1> to vector<64x64xi1>
    %118 = vector.broadcast %cst_39 : f32 to vector<64x64xf32>
    %119 = arith.select %117, %115, %118 : vector<64x64xi1>, vector<64x64xf32>
    %120 = arith.truncf %119 : vector<64x64xf32> to vector<64x64xbf16>
    %121 = tpu.concatenate %101, %107, %108, %114, %120 in 1 : vector<64x64xbf16>, vector<64x64xbf16>, vector<64x64xbf16>, vector<64x64xbf16>, vector<64x64xbf16> -> vector<64x320xbf16>
    %c1 = arith.constant 1 : index
    %c0_40 = arith.constant 0 : index
    %c0_41 = arith.constant 0 : index
    %122 = vector.load %arg4[%c1, %c0_40, %c0_41] : memref<3x320x128xbf16, #tpu.memory_space<vmem>>, vector<1x320x128xbf16>
    %123 = vector.shape_cast %122 : vector<1x320x128xbf16> to vector<320x128xbf16>
    %cst_42 = arith.constant dense<0.000000e+00> : vector<64x128xf32>
    %124 = tpu.matmul %121, %123, %cst_42 {dimension_numbers = #tpu.dot_dimension_numbers<[1], [0], [0], [1], [0, 0, 1, 1], [], []>} : vector<64x320xbf16>, vector<320x128xbf16>, vector<64x128xf32> -> vector<64x128xf32>
    %c1_43 = arith.constant 1 : index
    %c0_44 = arith.constant 0 : index
    %c0_45 = arith.constant 0 : index
    %125 = vector.load %arg5[%c1_43, %c0_44, %c0_45] : memref<3x1x128xf32, #tpu.memory_space<vmem>>, vector<1x1x128xf32>
    %126 = vector.shape_cast %125 : vector<1x1x128xf32> to vector<1x128xf32>
    %127 = vector.broadcast %126 : vector<1x128xf32> to vector<64x128xf32>
    %128 = arith.addf %124, %127 : vector<64x128xf32>
    %129 = vector.extract_strided_slice %128 {offsets = [0, 0], sizes = [64, 64], strides = [1, 1]} : vector<64x128xf32> to vector<64x64xf32>
    %130 = vector.extract_strided_slice %128 {offsets = [0, 64], sizes = [64, 64], strides = [1, 1]} : vector<64x128xf32> to vector<64x64xf32>
    %131 = arith.negf %130 : vector<64x64xf32>
    %132 = math.exp %131 : vector<64x64xf32>
    %cst_46 = arith.constant 1.000000e+00 : f32
    %133 = vector.broadcast %cst_46 : f32 to vector<64x64xf32>
    %134 = arith.addf %133, %132 : vector<64x64xf32>
    %135 = arith.divf %133, %134 : vector<64x64xf32>
    %136 = arith.mulf %129, %135 : vector<64x64xf32>
    %137 = arith.addf %136, %95 : vector<64x64xf32>
    %cst_47 = arith.constant 0.707106769 : f32
    %138 = vector.broadcast %cst_47 : f32 to vector<64x64xf32>
    %139 = arith.mulf %137, %138 : vector<64x64xf32>
    %c2_i32_48 = arith.constant 2 : i32
    %140 = tpu.dynamic_rotate %139 by %c2_i32_48 dim 0 : vector<64x64xf32>, i32 -> vector<64x64xf32>
    %cst_49 = arith.constant 0.000000e+00 : f32
    %141 = vector.shape_cast %30 : vector<64x1xi1> to vector<64x1xi1>
    %142 = vector.broadcast %141 : vector<64x1xi1> to vector<64x64xi1>
    %143 = vector.broadcast %cst_49 : f32 to vector<64x64xf32>
    %144 = arith.select %142, %140, %143 : vector<64x64xi1>, vector<64x64xf32>
    %145 = arith.truncf %144 : vector<64x64xf32> to vector<64x64xbf16>
    %c1_i32_50 = arith.constant 1 : i32
    %146 = tpu.dynamic_rotate %139 by %c1_i32_50 dim 0 : vector<64x64xf32>, i32 -> vector<64x64xf32>
    %cst_51 = arith.constant 0.000000e+00 : f32
    %147 = vector.shape_cast %37 : vector<64x1xi1> to vector<64x1xi1>
    %148 = vector.broadcast %147 : vector<64x1xi1> to vector<64x64xi1>
    %149 = vector.broadcast %cst_51 : f32 to vector<64x64xf32>
    %150 = arith.select %148, %146, %149 : vector<64x64xi1>, vector<64x64xf32>
    %151 = arith.truncf %150 : vector<64x64xf32> to vector<64x64xbf16>
    %152 = arith.truncf %139 : vector<64x64xf32> to vector<64x64xbf16>
    %c63_i32_52 = arith.constant 63 : i32
    %153 = tpu.dynamic_rotate %139 by %c63_i32_52 dim 0 : vector<64x64xf32>, i32 -> vector<64x64xf32>
    %cst_53 = arith.constant 0.000000e+00 : f32
    %154 = vector.shape_cast %44 : vector<64x1xi1> to vector<64x1xi1>
    %155 = vector.broadcast %154 : vector<64x1xi1> to vector<64x64xi1>
    %156 = vector.broadcast %cst_53 : f32 to vector<64x64xf32>
    %157 = arith.select %155, %153, %156 : vector<64x64xi1>, vector<64x64xf32>
    %158 = arith.truncf %157 : vector<64x64xf32> to vector<64x64xbf16>
    %c62_i32_54 = arith.constant 62 : i32
    %159 = tpu.dynamic_rotate %139 by %c62_i32_54 dim 0 : vector<64x64xf32>, i32 -> vector<64x64xf32>
    %cst_55 = arith.constant 0.000000e+00 : f32
    %160 = vector.shape_cast %51 : vector<64x1xi1> to vector<64x1xi1>
    %161 = vector.broadcast %160 : vector<64x1xi1> to vector<64x64xi1>
    %162 = vector.broadcast %cst_55 : f32 to vector<64x64xf32>
    %163 = arith.select %161, %159, %162 : vector<64x64xi1>, vector<64x64xf32>
    %164 = arith.truncf %163 : vector<64x64xf32> to vector<64x64xbf16>
    %165 = tpu.concatenate %145, %151, %152, %158, %164 in 1 : vector<64x64xbf16>, vector<64x64xbf16>, vector<64x64xbf16>, vector<64x64xbf16>, vector<64x64xbf16> -> vector<64x320xbf16>
    %c2 = arith.constant 2 : index
    %c0_56 = arith.constant 0 : index
    %c0_57 = arith.constant 0 : index
    %166 = vector.load %arg4[%c2, %c0_56, %c0_57] : memref<3x320x128xbf16, #tpu.memory_space<vmem>>, vector<1x320x128xbf16>
    %167 = vector.shape_cast %166 : vector<1x320x128xbf16> to vector<320x128xbf16>
    %cst_58 = arith.constant dense<0.000000e+00> : vector<64x128xf32>
    %168 = tpu.matmul %165, %167, %cst_58 {dimension_numbers = #tpu.dot_dimension_numbers<[1], [0], [0], [1], [0, 0, 1, 1], [], []>} : vector<64x320xbf16>, vector<320x128xbf16>, vector<64x128xf32> -> vector<64x128xf32>
    %c2_59 = arith.constant 2 : index
    %c0_60 = arith.constant 0 : index
    %c0_61 = arith.constant 0 : index
    %169 = vector.load %arg5[%c2_59, %c0_60, %c0_61] : memref<3x1x128xf32, #tpu.memory_space<vmem>>, vector<1x1x128xf32>
    %170 = vector.shape_cast %169 : vector<1x1x128xf32> to vector<1x128xf32>
    %171 = vector.broadcast %170 : vector<1x128xf32> to vector<64x128xf32>
    %172 = arith.addf %168, %171 : vector<64x128xf32>
    %173 = vector.extract_strided_slice %172 {offsets = [0, 0], sizes = [64, 64], strides = [1, 1]} : vector<64x128xf32> to vector<64x64xf32>
    %174 = vector.extract_strided_slice %172 {offsets = [0, 64], sizes = [64, 64], strides = [1, 1]} : vector<64x128xf32> to vector<64x64xf32>
    %175 = arith.negf %174 : vector<64x64xf32>
    %176 = math.exp %175 : vector<64x64xf32>
    %cst_62 = arith.constant 1.000000e+00 : f32
    %177 = vector.broadcast %cst_62 : f32 to vector<64x64xf32>
    %178 = arith.addf %177, %176 : vector<64x64xf32>
    %179 = arith.divf %177, %178 : vector<64x64xf32>
    %180 = arith.mulf %173, %179 : vector<64x64xf32>
    %181 = arith.addf %180, %139 : vector<64x64xf32>
    %cst_63 = arith.constant 0.707106769 : f32
    %182 = vector.broadcast %cst_63 : f32 to vector<64x64xf32>
    %183 = arith.mulf %181, %182 : vector<64x64xf32>
    %184 = arith.truncf %183 : vector<64x64xf32> to vector<64x64xbf16>
    %c0_64 = arith.constant 0 : index
    %c0_65 = arith.constant 0 : index
    %185 = vector.load %arg6[%c0_64, %c0_65] : memref<64x64xbf16, #tpu.memory_space<vmem>>, vector<64x64xbf16>
    %cst_66 = arith.constant dense<0.000000e+00> : vector<64x64xf32>
    %186 = tpu.matmul %184, %185, %cst_66 {dimension_numbers = #tpu.dot_dimension_numbers<[1], [0], [0], [1], [0, 0, 1, 1], [], []>} : vector<64x64xbf16>, vector<64x64xbf16>, vector<64x64xf32> -> vector<64x64xf32>
    %c0_67 = arith.constant 0 : index
    %c0_68 = arith.constant 0 : index
    %187 = vector.load %arg7[%c0_67, %c0_68] : memref<1x64xf32, #tpu.memory_space<vmem>>, vector<1x64xf32>
    %188 = vector.broadcast %187 : vector<1x64xf32> to vector<64x64xf32>
    %189 = arith.addf %186, %188 : vector<64x64xf32>
    %cst_69 = arith.constant 0.000000e+00 : f32
    %190 = vector.broadcast %cst_69 : f32 to vector<64x32xf32>
    %cst_70 = arith.constant 0.707106769 : f32
    %191 = vector.broadcast %cst_70 : f32 to vector<64x32xf32>
    %192 = arith.mulf %191, %0 : vector<64x32xf32>
    %193 = tpu.concatenate %190, %192 in 1 : vector<64x32xf32>, vector<64x32xf32> -> vector<64x64xf32>
    %194 = arith.addf %189, %193 : vector<64x64xf32>
    %c0_71 = arith.constant 0 : index
    %c0_72 = arith.constant 0 : index
    %195 = vector.load %arg8[%c0_71, %c0_72] : memref<64x64xf32, #tpu.memory_space<vmem>>, vector<64x64xf32>
    tpu.vector_store %arg8[%c0_71, %c0_72], %194 {strides = array<i32>} : memref<64x64xf32, #tpu.memory_space<vmem>>, vector<64x64xf32>,
    return
  }
  func.func @transform_0(%arg0: i32) -> (i32, i32) {
    %c0_i32 = arith.constant 0 : i32
    %c0_i32_0 = arith.constant 0 : i32
    return %arg0, %c0_i32 : i32, i32
  }
  func.func @transform_1(%arg0: i32) -> (i32, i32) {
    %c0_i32 = arith.constant 0 : i32
    %c0_i32_0 = arith.constant 0 : i32
    %c0_i32_1 = arith.constant 0 : i32
    return %c0_i32, %c0_i32_0 : i32, i32
  }
  func.func @transform_2(%arg0: i32) -> (i32, i32) {
    %c0_i32 = arith.constant 0 : i32
    %c0_i32_0 = arith.constant 0 : i32
    %c0_i32_1 = arith.constant 0 : i32
    return %c0_i32, %c0_i32_0 : i32, i32
  }
  func.func @transform_3(%arg0: i32) -> (i32, i32, i32) {
    %c0_i32 = arith.constant 0 : i32
    %c0_i32_0 = arith.constant 0 : i32
    %c0_i32_1 = arith.constant 0 : i32
    %c0_i32_2 = arith.constant 0 : i32
    return %c0_i32, %c0_i32_0, %c0_i32_1 : i32, i32, i32
  }
  func.func @transform_4(%arg0: i32) -> (i32, i32, i32) {
    %c0_i32 = arith.constant 0 : i32
    %c0_i32_0 = arith.constant 0 : i32
    %c0_i32_1 = arith.constant 0 : i32
    %c0_i32_2 = arith.constant 0 : i32
    return %c0_i32, %c0_i32_0, %c0_i32_1 : i32, i32, i32
  }
  func.func @transform_5(%arg0: i32) -> (i32, i32) {
    %c0_i32 = arith.constant 0 : i32
    %c0_i32_0 = arith.constant 0 : i32
    %c0_i32_1 = arith.constant 0 : i32
    return %c0_i32, %c0_i32_0 : i32, i32
  }
  func.func @transform_6(%arg0: i32) -> (i32, i32) {
    %c0_i32 = arith.constant 0 : i32
    %c0_i32_0 = arith.constant 0 : i32
    %c0_i32_1 = arith.constant 0 : i32
    return %c0_i32, %c0_i32_0 : i32, i32
  }
  func.func @transform_7(%arg0: i32) -> (i32, i32) {
    %c0_i32 = arith.constant 0 : i32
    %c0_i32_0 = arith.constant 0 : i32
    return %arg0, %c0_i32 : i32, i32
  }
}

</mosaic_0001>

<bundles_post_ra>
// kernel: tpu_custom_call.1
= control target key start
LH: loop header
LB: loop body
LE: loop exit
PB: predicated region body
PF: predicated region fallthrough
CT: control target
= control target key end

     0   :  { %12 = vsyncpa [#allocation3], 0  ;;  %s4208_s0 = inlined_call_operand.hbm [shape: f32[64,32], index: 0, kind: input, shape index: {}]   ;;  %s4209_s1 = inlined_call_operand.hbm [shape: bf16[32,64], index: 1, kind: input, shape index: {}]   ;;  %s4210_s2 = inlined_call_operand.hbm [shape: f32[1,64], index: 2, kind: input, shape index: {}]   ;;  %s4211_s3 = inlined_call_operand.hbm [shape: bf16[3,320,128], index: 3, kind: input, shape index: {}]   ;;  %s4212_s4 = inlined_call_operand.hbm [shape: f32[3,1,128], index: 4, kind: input, shape index: {}]   ;;  %s4213_s5 = inlined_call_operand.hbm [shape: bf16[64,64], index: 5, kind: input, shape index: {}]   ;;  %s4214_s6 = inlined_call_operand.hbm [shape: f32[1,64], index: 6, kind: input, shape index: {}]   ;;  %s4215_s7 = inlined_call_operand.hbm [shape: f32[64,64], index: 7, kind: output, shape index: {}]  }
   0x1   :  { %13 = vsyncpa [#allocation6], 0 }
   0x2   :  { %14 = vsyncpa [#allocation9], 0 }
   0x3   :  { %15 = vsyncpa [#allocation12], 0 }
   0x4   :  { %16 = vsyncpa [#allocation4], 0  ;;  %s3217_s24 = smov [#allocation5]   ;;  %s3031_s28 = scalar_lea.hbm %s4209_s1, 256 }
   0x5   :  { %s34_s25 = sshll.u32 %s3217_s24, 4  ;;  %p3032_p0 = scmp.ne.s32.totalorder %s4209_s1, %s3031_s28  ;;  %s35_s25 = int_to_ptr.vmem [resolvable:$true] %s34_s25 }
   0x6   :  { %p3035_p1 = scmp.lt.u32.totalorder %s3031_s28, %s4209_s1 }
   0x8   :  { %p3037_p2 = pnand %p3035_p1, %p3032_p0 }
   0xa   :  { %3040 = shalt.err (!%p3037_p2)
}
   0xb   :  { %s3041_s10 = scalar_lea.vmem %s35_s25, 256  ;;  %p3046_p4 = scmp.lt.s32.totalorder %s35_s25, %s35_s25 }
   0xc   :  { %p3042_p3 = scmp.ne.s32.totalorder %s35_s25, %s3041_s10  ;;  %p3047_p5 = scmp.lt.s32.totalorder %s3041_s10, %s3041_s10 }
   0xe   :  { %p3048_p6 = por %p3047_p5, %p3046_p4 }
  0x10   :  { %p3049_p7 = pnand %p3048_p6, %p3042_p3 }
  0x12   :  { %3052 = shalt.err (!%p3049_p7)
}
  0x13   :  { %s3218_s11 = smov 64   ;;  %s3219_s12 = smov 4  }
  0x14   :  { %40 = dma.hbm_to_vmem [thread:$0]  %s4209_s1, 256, %s35_s25, [#allocation6], %s3218_s11, %s3218_s11, %s3219_s12  }
  0x15   :  { %s3220_s15 = smov [#allocation8]   ;;  %s3221_s17 = smov [#allocation11]  }
  0x16   :  { %s56_s16 = sshll.u32 %s3220_s15, 4  ;;  %s80_s18 = sshll.u32 %s3221_s17, 4  ;;  %s57_s16 = int_to_ptr.vmem [resolvable:$true] %s56_s16  ;;  %s81_s18 = int_to_ptr.vmem [resolvable:$true] %s80_s18 }
  0x17   :  { %s3053_s21 = scalar_lea.hbm %s4211_s3, 7680 }
  0x18   :  { %p3054_p8 = scmp.ne.s32.totalorder %s4211_s3, %s3053_s21  ;;  %p3057_p9 = scmp.lt.u32.totalorder %s3053_s21, %s4211_s3 }
  0x1a   :  { %p3059_p10 = pnand %p3057_p9, %p3054_p8 }
  0x1c   :  { %3062 = shalt.err (!%p3059_p10)
}
  0x1d   :  { %s3063_s1 = scalar_lea.vmem %s57_s16, 7680  ;;  %p3068_p12 = scmp.lt.s32.totalorder %s57_s16, %s57_s16 }
  0x1e   :  { %p3064_p11 = scmp.ne.s32.totalorder %s57_s16, %s3063_s1  ;;  %p3069_p13 = scmp.lt.s32.totalorder %s3063_s1, %s3063_s1 }
  0x20   :  { %p3070_p0 = por %p3069_p13, %p3068_p12 }
  0x22   :  { %p3071_p1 = pnand %p3070_p0, %p3064_p11 }
  0x24   :  { %3074 = shalt.err (!%p3071_p1)
}
  0x25   :  { %62 = dma.hbm_to_vmem [thread:$0]  %s4211_s3, 7680, %s57_s16, [#allocation9], %s3218_s11, %s3218_s11, %s3219_s12  }
  0x26   :  { %s3075_s30 = scalar_lea.hbm %s4213_s5, 512 }
  0x27   :  { %p3076_p2 = scmp.ne.s32.totalorder %s4213_s5, %s3075_s30  ;;  %p3079_p3 = scmp.lt.u32.totalorder %s3075_s30, %s4213_s5 }
  0x29   :  { %p3081_p4 = pnand %p3079_p3, %p3076_p2 }
  0x2b   :  { %3084 = shalt.err (!%p3081_p4)
}
  0x2c   :  { %s3085_s14 = scalar_lea.vmem %s81_s18, 512  ;;  %p3090_p6 = scmp.lt.s32.totalorder %s81_s18, %s81_s18 }
  0x2d   :  { %p3086_p5 = scmp.ne.s32.totalorder %s81_s18, %s3085_s14  ;;  %p3091_p7 = scmp.lt.s32.totalorder %s3085_s14, %s3085_s14 }
  0x2f   :  { %p3092_p8 = por %p3091_p7, %p3090_p6 }
  0x31   :  { %p3093_p9 = pnand %p3092_p8, %p3086_p5 }
  0x33   :  { %3096 = shalt.err (!%p3093_p9)
}
  0x34   :  { %86 = dma.hbm_to_vmem [thread:$0]  %s4213_s5, 512, %s81_s18, [#allocation12], %s3218_s11, %s3218_s11, %s3219_s12  }
  0x35   :  { %s3222_s16 = smov [#allocation2]   ;;  %s3097_s21 = scalar_lea.hbm %s4208_s0, 1024 }
  0x36   :  { %s22_s17 = sshll.u32 %s3222_s16, 4  ;;  %p3098_p10 = scmp.ne.s32.totalorder %s4208_s0, %s3097_s21  ;;  %s23_s17 = int_to_ptr.vmem [resolvable:$true] %s22_s17 }
  0x37   :  { %p3101_p11 = scmp.lt.u32.totalorder %s3097_s21, %s4208_s0 }
  0x39   :  { %p3103_p12 = pnand %p3101_p11, %p3098_p10 }
  0x3b   :  { %3106 = shalt.err (!%p3103_p12)
}
  0x3c   :  { %s3107_s1 = scalar_lea.vmem %s23_s17, 1024  ;;  %p3112_p0 = scmp.lt.s32.totalorder %s23_s17, %s23_s17 }
  0x3d   :  { %p3108_p13 = scmp.ne.s32.totalorder %s23_s17, %s3107_s1  ;;  %p3113_p1 = scmp.lt.s32.totalorder %s3107_s1, %s3107_s1 }
  0x3f   :  { %p3114_p2 = por %p3113_p1, %p3112_p0 }
  0x41   :  { %p3115_p3 = pnand %p3114_p2, %p3108_p13 }
  0x43   :  { %3118 = shalt.err (!%p3115_p3)
}
  0x44   :  { %s3223_s5 = smov 128   ;;  %s3224_s12 = smov 8  }
  0x45   :  { %28 = dma.hbm_to_vmem [thread:$0]  %s4208_s0, 1024, %s23_s17, [#allocation3], %s3223_s5, %s3223_s5, %s3224_s12  }
  0x46   :  { %s3225_s27 = smov [#allocation7]   ;;  %s3226_s29 = smov [#allocation10]  }
  0x47   :  { %s47_s28 = sshll.u32 %s3225_s27, 4  ;;  %s68_s30 = sshll.u32 %s3226_s29, 4  ;;  %s48_s28 = int_to_ptr.vmem [resolvable:$true] %s47_s28  ;;  %s3332_s30 = int_to_ptr.vmem [resolvable:$true] %s68_s30 }
  0x48   :  { %s3119_s10 = scalar_lea.hbm %s4210_s2, 16 }
  0x49   :  { %p3120_p4 = scmp.ne.s32.totalorder %s4210_s2, %s3119_s10  ;;  %p3123_p5 = scmp.lt.u32.totalorder %s3119_s10, %s4210_s2 }
  0x4b   :  { %p3125_p6 = pnand %p3123_p5, %p3120_p4 }
  0x4d   :  { %3128 = shalt.err (!%p3125_p6)
}
  0x4e   :  { %s3129_s0 = scalar_lea.vmem %s48_s28, 16  ;;  %s3133_s16 = scalar_lea.vmem %s48_s28, 32 }
  0x4f   :  { %p3130_p7 = scmp.ne.s32.totalorder %s48_s28, %s3129_s0  ;;  %p3134_p8 = scmp.lt.s32.totalorder %s48_s28, %s48_s28 }
  0x50   :  { %p3135_p9 = scmp.lt.s32.totalorder %s3133_s16, %s3129_s0 }
  0x52   :  { %p3136_p10 = por %p3135_p9, %p3134_p8 }
  0x54   :  { %p3137_p11 = pnand %p3136_p10, %p3130_p7 }
  0x56   :  { %3140 = shalt.err (!%p3137_p11)
}
  0x57   :  { %50 = dma.hbm_to_vmem [thread:$0]  %s4210_s2, 16, %s48_s28, [#allocation6]  }
  0x58   :  { %s3141_s22 = scalar_lea.hbm %s4212_s4, 48 }
  0x59   :  { %p3142_p12 = scmp.ne.s32.totalorder %s4212_s4, %s3141_s22  ;;  %p3145_p13 = scmp.lt.u32.totalorder %s3141_s22, %s4212_s4 }
  0x5b   :  { %p3147_p0 = pnand %p3145_p13, %p3142_p12 }
  0x5d   :  { %3150 = shalt.err (!%p3147_p0)
}
  0x5e   :  { %s3151_s18 = scalar_lea.vmem %s3332_s30, 48  ;;  %s3155_s2 = scalar_lea.vmem %s3332_s30, 64 }
  0x5f   :  { %p3152_p1 = scmp.ne.s32.totalorder %s3332_s30, %s3151_s18  ;;  %p3156_p2 = scmp.lt.s32.totalorder %s3332_s30, %s3332_s30 }
  0x60   :  { %p3157_p3 = scmp.lt.s32.totalorder %s3155_s2, %s3151_s18 }
  0x62   :  { %p3158_p4 = por %p3157_p3, %p3156_p2 }
  0x64   :  { %p3159_p5 = pnand %p3158_p4, %p3152_p1 }
  0x66   :  { %3162 = shalt.err (!%p3159_p5)
}
  0x67   :  { %s3227_s25 = smov 16   ;;  %s3228_s27 = smov 1  }
  0x68   :  { %74 = dma.hbm_to_vmem [thread:$0]  %s4212_s4, 48, %s3332_s30, [#allocation9], %s3227_s25, %s3227_s25, %s3228_s27  }
  0x69   :  { %s3229_s8 = smov [#allocation13]   ;;  %s3163_s14 = scalar_lea.hbm %s4214_s6, 16 }
  0x6a   :  { %s93_s9 = sshll.u32 %s3229_s8, 4  ;;  %p3164_p6 = scmp.ne.s32.totalorder %s4214_s6, %s3163_s14  ;;  %s94_s9 = int_to_ptr.vmem [resolvable:$true] %s93_s9 }
  0x6b   :  { %p3167_p7 = scmp.lt.u32.totalorder %s3163_s14, %s4214_s6 }
  0x6d   :  { %p3169_p8 = pnand %p3167_p7, %p3164_p6 }
  0x6f   :  { %3172 = shalt.err (!%p3169_p8)
}
  0x70   :  { %s3173_s17 = scalar_lea.vmem %s94_s9, 16  ;;  %s3177_s4 = scalar_lea.vmem %s94_s9, 32 }
  0x71   :  { %p3174_p9 = scmp.ne.s32.totalorder %s94_s9, %s3173_s17  ;;  %p3178_p10 = scmp.lt.s32.totalorder %s94_s9, %s94_s9 }
  0x72   :  { %p3179_p11 = scmp.lt.s32.totalorder %s3177_s4, %s3173_s17 }
  0x74   :  { %p3180_p12 = por %p3179_p11, %p3178_p10 }
  0x76   :  { %p3181_p13 = pnand %p3180_p12, %p3174_p9 }
  0x78   :  { %3184 = shalt.err (!%p3181_p13)
}
  0x79   :  { %96 = dma.hbm_to_vmem [thread:$0]  %s4214_s6, 16, %s94_s9, [#allocation12]  }
  0x7a   :  { %3207 = dma.done.wait [#allocation3], 1024  }
  0x7b   :  { %3208 = vsyncadd [#allocation3], 4294966272 }
  0x7c   :  { %3209 = dma.done.wait [#allocation6], 272  }
  0x7d   :  { %3210 = vsyncadd [#allocation6], 4294967024 }
  0x7e   :  { %3211 = dma.done.wait [#allocation9], 7728  }
  0x7f   :  { %3212 = vsyncadd [#allocation9], 4294959568 }
  0x80   :  { %3213 = dma.done.wait [#allocation12], 528  }
  0x81   :  { %3214 = vsyncadd [#allocation12], 4294966768  ;;  %v2861_v0 = vld [vmem:[#allocation5] sm:$0xff]   ;;  %v2862_v1 = vld [vmem:[#allocation5 + $0x8] sm:$0xff]   ;;  %vm4216_vm0 = vcmask 261120   ;;  %v232_v30 = vlaneseq  ;;  %vm673_vm6 = vcmask 523264  }
  0x82   :  { %2770 = vmatprep.subr.bf16.mxu0 %v2861_v0  ;;  %v119_v2 = vld [vmem:[#allocation2] sm:$0xff]  ;;  %v120_v3 = vld [vmem:[#allocation2 + $0x8] sm:$0xff]  ;;  %v121_v5 = vld [vmem:[#allocation2 + $0x10] sm:$0xff]  ;;  %s3230_s6 = smov 32  }
  0x83   :  { %2771 = vmatpush3.bf16.msra.mxu0 %v2861_v0  ;;  %v127_v4 = vpack.c.bf16 %v120_v3, %v119_v2  ;;  %v122_v6 = vld [vmem:[#allocation2 + $0x18] sm:$0xff]  ;;  %v123_v7 = vld [vmem:[#allocation2 + $0x20] sm:$0xff]  ;;  %v124_v8 = vld [vmem:[#allocation2 + $0x28] sm:$0xff]  ;;  %v3380_v31 = vshrl.u32 %v232_v30, 7 }
  0x84   :  { %2772 = vmatprep.subr.bf16.mxu0 %v2862_v1  ;;  %v128_v9 = vpack.c.bf16 %v122_v6, %v121_v5  ;;  %v129_v10 = vpack.c.bf16 %v124_v8, %v123_v7  ;;  %v125_v11 = vld [vmem:[#allocation2 + $0x30] sm:$0xff]  ;;  %v126_v12 = vld [vmem:[#allocation2 + $0x38] sm:$0xff]  ;;  %v2865_v16 = vld [vmem:[#allocation8 + $0x90] sm:$0xff]  }
  0x85   :  { %2774 = vmatprep.mubr.msk.bf16.mxu0 %vm4216_vm0, %v127_v4  ;;  %v130_v13 = vpack.c.bf16 %v126_v12, %v125_v11  ;;  %v2863_v14 = vld [vmem:[#allocation8 + $0x80] sm:$0xff]   ;;  %v2864_v15 = vld [vmem:[#allocation8 + $0x88] sm:$0xff]   ;;  %v2866_v17 = vld [vmem:[#allocation8 + $0x98] sm:$0xff]   ;;  %v234_v32 = vadd.s32 8, %v3380_v31  ;;  %v3384_v33 = vadd.s32 16, %v3380_v31  ;;  %v236_v34 = vadd.s32 24, %v3380_v31 }
  0x86   :  { %v2867_v18 = vld [vmem:[#allocation8 + $0x40] sm:$0xff]   ;;  %v2869_v20 = vld [vmem:[#allocation8 + $0x48] sm:$0xff]   ;;  %v2871_v22 = vld [vmem:[#allocation8 + $0x50] sm:$0xff]   ;;  %v238_v36 = vadd.s32 40, %v3380_v31  ;;  %v3390_v38 = vadd.s32 32, %v3380_v31  ;;  %v240_v39 = vadd.s32 56, %v3380_v31 }
  0x87   :  { %2773 = vmatpush3.bf16.msra.mxu0 %v2862_v1  ;;  %v2868_v19 = vld [vmem:[#allocation8] sm:$0xff]   ;;  %2618 = vmatprep.subr.bf16.mxu1 %v2867_v18  ;;  %v2870_v21 = vld [vmem:[#allocation8 + $0x8] sm:$0xff]   ;;  %v2872_v23 = vld [vmem:[#allocation8 + $0x10] sm:$0xff]   ;;  %v252_v35 = vand.u32 15, %v234_v32  ;;  %v259_v37 = vand.u32 15, %v3384_v33  ;;  %v266_v40 = vand.u32 15, %v236_v34 }
  0x88   :  { %2782 = vmatprep.subr.bf16.mxu0 %v2863_v14  ;;  %2619 = vmatpush3.bf16.msra.mxu1 %v2868_v19  ;;  %v2873_v24 = vld [vmem:[#allocation8 + $0x58] sm:$0xff]   ;;  %v2875_v26 = vld [vmem:[#allocation8 + $0x60] sm:$0xff]   ;;  %v2877_v28 = vld [vmem:[#allocation8 + $0x68] sm:$0xff]   ;;  %v3394_v41 = vadd.s32 48, %v3380_v31  ;;  %v245_v44 = vand.u32 15, %v3380_v31  ;;  %v280_v46 = vand.u32 15, %v238_v36 }
  0x89   :  { %2620 = vmatprep.subr.bf16.mxu1 %v2869_v20  ;;  %v2874_v25 = vld [vmem:[#allocation8 + $0x18] sm:$0xff]   ;;  %v2876_v27 = vld [vmem:[#allocation8 + $0x20] sm:$0xff]   ;;  %v2878_v29 = vld [vmem:[#allocation8 + $0x28] sm:$0xff]   ;;  %v3396_v42 = vadd.s32 2, %v252_v35  ;;  %v3398_v43 = vadd.s32 1, %v252_v35  ;;  %v3405_v47 = vadd.s32 4294967295, %v259_v37 }
  0x8a   :  { %2775 = vmatmul.mubr.msk.bf16.vlgmr.msra.gmra.mrb[0].mxu0 %vm4216_vm0, %v128_v9  ;;  %v3401_v45 = vld [vmem:[#allocation7] ss:$0 sm:$0xff]  ;;  %v2879_v48 = vld [vmem:[#allocation8 + $0x70] sm:$0xff]   ;;  %vm612_vm1 = vcmp.lt.s32.totalorder %v3380_v31, 6  ;;  %vm567_vm2 = vcmp.lt.s32.totalorder %v3380_v31, 7  ;;  %v273_v50 = vand.u32 15, %v3390_v38 }
  0x8b   :  { %2778 = vmatprep.mubr.msk.bf16.mxu0 %vm4216_vm0, %v129_v10  ;;  %2783 = vmatpush3.bf16.msra.mxu0 %v2863_v14  ;;  %v2880_v49 = vld [vmem:[#allocation8 + $0x30] sm:$0xff]   ;;  %v294_v51 = vand.u32 15, %v240_v39  ;;  %v3410_v53 = vadd.s32 1, %v266_v40  ;;  %v3412_v54 = vadd.s32 2, %v266_v40  ;;  %vm518_vm3 = vcmp.lt.s32.totalorder %v3380_v31, 1  ;;  %v2881_v56 = vld [vmem:[#allocation8 + $0x78] sm:$0xff]  }
  0x8c   :  { %2784 = vmatprep.subr.bf16.mxu0 %v2864_v15  ;;  %2621 = vmatpush3.bf16.msra.mxu1 %v2870_v21  ;;  %v287_v55 = vand.u32 15, %v3394_v41  ;;  %vm450_vm4 = vcmp.lt.s32.totalorder %v3396_v42, 16  ;;  %vm418_vm5 = vcmp.lt.s32.totalorder %v3398_v43, 16  ;;  %v3423_v59 = vadd.s32 4294967295, %v245_v44  ;;  %v2882_v60 = vld [vmem:[#allocation8 + $0x38] sm:$0xff]  }
  0x8d   :  { %2622 = vmatprep.subr.bf16.mxu1 %v2871_v22  ;;  %v3428_v63 = vadd.s32 2, %v280_v46  ;;  %vm379_vm7 = vcmp.ge.s32.totalorder %v3405_v47, 0  ;;  %v3434_v2 = vadd.s32 1, %v280_v46  ;;  %v3438_v3 = vadd.s32 4294967295, %v273_v50 }
  0x8e   :  { %v3440_v4 = vadd.s32 2, %v294_v51  ;;  %vm420_vm8 = vcmp.lt.s32.totalorder %v3410_v53, 16  ;;  %vm452_vm9 = vcmp.lt.s32.totalorder %v3412_v54, 16  ;;  %v3448_v7 = vadd.s32 1, %v294_v51 }
  0x8f   :  { %2785 = vmatpush3.bf16.msra.mxu0 %v2864_v15  ;;  %v3452_v8 = vadd.s32 4294967295, %v287_v55  ;;  %vm377_vm10 = vcmp.ge.s32.totalorder %v3423_v59, 0  ;;  %vm4223_vm11 = vcmp.lt.s32.totalorder %v3428_v63, 16  ;;  %vm4222_vm12 = vcmp.lt.s32.totalorder %v3434_v2, 16 }
  0x90   :  { %2786 = vmatprep.subr.bf16.mxu0 %v2865_v16  ;;  %2623 = vmatpush3.bf16.msra.mxu1 %v2872_v23  ;;  %vm4224_vm13 = vcmp.ge.s32.totalorder %v3438_v3, 0  ;;  %vm4218_vm14 = vcmp.lt.s32.totalorder %v3440_v4, 16  ;;  %vm4217_vm15 = vcmp.lt.s32.totalorder %v3448_v7, 16 }
  0x91   :  { %2624 = vmatprep.subr.bf16.mxu1 %v2873_v24 }
  0x92   :  { %2779 = vmatmul.mubr.msk.bf16.gmra.mrb[4].mxu0 %vm4216_vm0, %v130_v13  ;;  %vm4219_vm0 = vcmp.ge.s32.totalorder %v3452_v8, 0 }
  0x93   :  { %2787 = vmatpush3.bf16.msra.mxu0 %v2865_v16 }
  0x94   :  { %2788 = vmatprep.subr.bf16.mxu0 %v2866_v17  ;;  %2625 = vmatpush3.bf16.msra.mxu1 %v2874_v25 }
  0x95   :  { %2626 = vmatprep.subr.bf16.mxu1 %v2875_v26 }
  0x97   :  { %2789 = vmatpush3.bf16.msra.mxu0 %v2866_v17 }
  0x98   :  { %2627 = vmatpush3.bf16.msra.mxu1 %v2876_v27 }
  0x99   :  { %2628 = vmatprep.subr.bf16.mxu1 %v2877_v28 }
  0x9c   :  { %2629 = vmatpush3.bf16.msra.mxu1 %v2878_v29 }
  0x9d   :  { %2630 = vmatprep.subr.bf16.mxu1 %v2879_v48 }
  0xa0   :  { %2631 = vmatpush3.bf16.msra.mxu1 %v2880_v49 }
  0xa1   :  { %2632 = vmatprep.subr.bf16.mxu1 %v2881_v56 }
  0xa4   :  { %2633 = vmatpush3.bf16.msra.mxu1 %v2882_v60 }
 0x15d   :  { %v2776_v52 = vpop.f32.mrb[0].mxu0 }
 0x15e   :  { %v3417_v57 = vadd.f32 %v2776_v52, %v3401_v45  ;;  %v201_v58 = vpop.f32.mrb[1].mxu0 }
 0x15f   :  { %v3426_v61 = vadd.f32 %v3401_v45, %v201_v58  ;;  %v2777_v62 = vpop.f32.mrb[2].mxu0 }
 0x160   :  { %v3432_v0 = vadd.f32 %v2777_v62, %v3401_v45  ;;  %v204_v1 = vpop.f32.mrb[3].mxu0  ;;  %v606_v6 = vrot.slane %v3417_v57, 2  ;;  %v561_v10 = vrot.slane %v3417_v57, 1  ;;  %v512_v19 = vrot.slane %v3417_v57, 7 }
 0x161   :  { %v3443_v5 = vadd.f32 %v3401_v45, %v204_v1  ;;  %v604_v9 = vrot.slane %v3426_v61, 2  ;;  %v559_v14 = vrot.slane %v3426_v61, 1  ;;  %v510_v18 = vrot.slane %v3426_v61, 7 }
 0x162   :  { %v562_v11 = vrot.slane %v3432_v0, 1  ;;  %v607_v12 = vrot.slane %v3432_v0, 2  ;;  %v513_v20 = vrot.slane %v3432_v0, 7 }
 0x163   :  { %v605_v13 = vrot.slane %v3443_v5, 2  ;;  %v560_v15 = vrot.slane %v3443_v5, 1  ;;  %v511_v16 = vrot.slane %v3443_v5, 7 }
 0x164   :  { %v572_v17 = vsel %vm567_vm2, %v561_v10, %v562_v11  ;;  %v617_v30 = vsel %vm612_vm1, %v606_v6, %v607_v12 }
 0x165   :  { %v2780_v21 = vpop.f32.mrb[4].mxu0  ;;  %v618_v22 = vsel %vm612_vm1, %v605_v13, %v606_v6  ;;  %v619_v23 = vsel %vm612_vm1, %v604_v9, %v605_v13  ;;  %v573_v24 = vsel %vm567_vm2, %v560_v15, %v561_v10  ;;  %v574_v25 = vsel %vm567_vm2, %v559_v14, %v560_v15 }
 0x166   :  { %v3483_v26 = vadd.f32 %v2780_v21, %v3401_v45  ;;  %v217_v27 = vpop.f32.mrb[5].mxu0  ;;  %v638_v28 = vsel %vm450_vm4, %v618_v22, 0.0  ;;  %v593_v29 = vsel %vm418_vm5, %v573_v24, 0.0  ;;  %v524_v39 = vsel %vm518_vm3, %v511_v16, %v512_v19 }
 0x167   :  { %v3492_v32 = vadd.f32 %v3401_v45, %v217_v27  ;;  %v2781_v34 = vpop.f32.mrb[6].mxu0  ;;  %v645_v35 = vpack.c.bf16 %v638_v28, %v619_v23  ;;  %v600_v36 = vpack.c.bf16 %v593_v29, %v574_v25  ;;  %v525_v48 = vsel %vm518_vm3, %v510_v18, %v511_v16 }
 0x168   :  { %v3498_v40 = vadd.f32 %v2781_v34, %v3401_v45  ;;  %v220_v46 = vpop.f32.mrb[7].mxu0  ;;  %v610_v49 = vrot.slane %v3483_v26, 2  ;;  %v545_v51 = vsel %vm379_vm7, %v524_v39, 0.0  ;;  %v565_v60 = vrot.slane %v3483_v26, 1 }
 0x169   :  { %v3506_v52 = vadd.f32 %v3401_v45, %v220_v46  ;;  %2790 = vmatprep.mubr.msk.bf16.mxu0 %vm673_vm6, %v645_v35  ;;  %665 = vrot.lane.b32.xlu0 %v600_v36, %s3218_s11  ;;  %v563_v56 = vrot.slane %v3492_v32, 1  ;;  %v608_v58 = vrot.slane %v3492_v32, 2  ;;  %v514_v1 = vrot.slane %v3492_v32, 7 }
 0x16a   :  { %v517_v62 = vrot.slane %v3498_v40, 7  ;;  %v611_v6 = vrot.slane %v3498_v40, 2  ;;  %v566_v10 = vrot.slane %v3498_v40, 1  ;;  %v523_v36 = vsel %vm518_vm3, %v512_v19, %v513_v20 }
 0x16b   :  { %v571_v45 = vsel %vm567_vm2, %v562_v11, %v563_v56  ;;  %v616_v13 = vsel %vm612_vm1, %v607_v12, %v608_v58  ;;  %v609_v15 = vrot.slane %v3506_v52, 2  ;;  %v564_v16 = vrot.slane %v3506_v52, 1 }
 0x16c   :  { %v595_v21 = vsel %vm420_vm8, %v571_v45, 0.0  ;;  %v640_v22 = vsel %vm452_vm9, %v616_v13, 0.0  ;;  %v526_v23 = vsel %vm518_vm3, %v517_v62, %v510_v18  ;;  %v515_v24 = vrot.slane %v3506_v52, 7 }
 0x16d   :  { %v601_v25 = vpack.c.bf16 %v595_v21, %v572_v17  ;;  %v646_v11 = vpack.c.bf16 %v640_v22, %v617_v30  ;;  %v543_v12 = vsel %vm377_vm10, %v526_v23, 0.0  ;;  %v614_v27 = vsel %vm612_vm1, %v609_v15, %v610_v49 }
 0x16e   :  { %v551_v28 = vpack.c.bf16 %v525_v48, %v543_v12  ;;  %v615_v29 = vsel %vm612_vm1, %v608_v58, %v609_v15  ;;  %v642_v34 = vsel %vm4223_vm11, %v614_v27, 0.0  ;;  %v569_v18 = vsel %vm567_vm2, %v564_v16, %v565_v60 }
 0x16f   :  { %667 = vrot.lane.b32.xlu1 %v601_v25, %s3218_s11  ;;  %2791 = vmatmul.mubr.msk.bf16.vlgmr.msra.gmra.mrb[8].mxu0 %vm673_vm6, %v646_v11  ;;  %v647_v17 = vpack.c.bf16 %v642_v34, %v615_v29  ;;  %v570_v30 = vsel %vm567_vm2, %v563_v56, %v564_v16  ;;  %v597_v35 = vsel %vm4222_vm12, %v569_v18, 0.0  ;;  %v522_v39 = vsel %vm518_vm3, %v513_v20, %v514_v1 }
 0x170   :  { %653 = vrot.lane.b32.xlu0 %v551_v28, %s3218_s11  ;;  %v620_v46 = vsel %vm612_vm1, %v611_v6, %v604_v9  ;;  %v552_v48 = vpack.c.bf16 %v523_v36, %v545_v51  ;;  %v602_v56 = vpack.c.bf16 %v597_v35, %v570_v30  ;;  %v521_v58 = vsel %vm518_vm3, %v514_v1, %v515_v24 }
 0x171   :  { %2794 = vmatprep.mubr.msk.bf16.mxu0 %vm673_vm6, %v647_v17  ;;  %v575_v19 = vsel %vm567_vm2, %v566_v10, %v559_v14  ;;  %v547_v20 = vsel %vm4224_vm13, %v522_v39, 0.0  ;;  %v613_v9 = vsel %vm612_vm1, %v610_v49, %v611_v6  ;;  %v644_v45 = vsel %vm4218_vm14, %v620_v46, 0.0 }
 0x172   :  { %v516_v51 = vrot.slane %v3483_v26, 7  ;;  %v568_v1 = vsel %vm567_vm2, %v565_v60, %v566_v10  ;;  %v599_v13 = vsel %vm4217_vm15, %v575_v19, 0.0  ;;  %v553_v49 = vpack.c.bf16 %v521_v58, %v547_v20 }
 0x173   :  { %655 = vrot.lane.b32.xlu1 %v552_v48, %s3218_s11  ;;  %v648_v6 = vpack.c.bf16 %v644_v45, %v613_v9  ;;  %v603_v15 = vpack.c.bf16 %v599_v13, %v568_v1  ;;  %v3590_v21 = vadd.s32 4294967294, %v245_v44  ;;  %v472_v22 = vrot.slane %v3498_v40, 6 }
 0x174   :  { %669 = vrot.lane.b32.xlu0 %v602_v56, %s3218_s11  ;;  %v520_v14 = vsel %vm518_vm3, %v515_v24, %v516_v51  ;;  %v519_v60 = vsel %vm518_vm3, %v516_v51, %v517_v62  ;;  %v465_v23 = vrot.slane %v3426_v61, 6  ;;  %v555_v24 = vpack.c.bf16 %v3443_v5, %v3426_v61 }
 0x175   :  { %v549_v16 = vsel %vm4219_vm0, %v520_v14, 0.0  ;;  %vm473_vm15 = vcmp.lt.s32.totalorder %v3380_v31, 2  ;;  %vm4221_vm14 = vcmp.ge.s32.totalorder %v3590_v21, 0  ;;  %v466_v44 = vrot.slane %v3443_v5, 6 }
 0x176   :  { %v554_v10 = vpack.c.bf16 %v519_v60, %v549_v16  ;;  %v481_v62 = vsel %vm473_vm15, %v472_v22, %v465_v23  ;;  %v3606_v27 = vadd.s32 4294967294, %v259_v37  ;;  %v467_v18 = vrot.slane %v3417_v57, 6 }
 0x177   :  { %657 = vrot.lane.b32.xlu1 %v553_v49, %s3218_s11  ;;  %2795 = vmatmul.mubr.msk.bf16.gmra.mrb[12].mxu0 %vm673_vm6, %v648_v6  ;;  %v498_v12 = vsel %vm4221_vm14, %v481_v62, 0.0  ;;  %v480_v28 = vsel %vm473_vm15, %v465_v23, %v466_v44  ;;  %v556_v30 = vpack.c.bf16 %v3432_v0, %v3417_v57  ;;  %v468_v36 = vrot.slane %v3432_v0, 6 }
 0x178   :  { %671 = vrot.lane.b32.xlu0 %v603_v15, %s3218_s11  ;;  %v506_v34 = vpack.c.bf16 %v480_v28, %v498_v12  ;;  %vm4220_vm0 = vcmp.ge.s32.totalorder %v3606_v27, 0  ;;  %v479_v33 = vsel %vm473_vm15, %v466_v44, %v467_v18  ;;  %v3623_v46 = vadd.s32 4294967294, %v273_v50 }
 0x179   :  { %v500_v39 = vsel %vm4220_vm0, %v479_v33, 0.0  ;;  %v469_v48 = vrot.slane %v3492_v32, 6  ;;  %v478_v58 = vsel %vm473_vm15, %v467_v18, %v468_v36  ;;  %v557_v9 = vpack.c.bf16 %v3506_v52, %v3492_v32  ;;  %v2504_v33 = vld [vmem:[#allocation10] ss:$0 sm:$0xff] }
 0x17a   :  { %v507_v20 = vpack.c.bf16 %v478_v58, %v500_v39  ;;  %v470_v45 = vrot.slane %v3506_v52, 6  ;;  %vm349_vm0 = vcmp.ge.s32.totalorder %v3623_v46, 0  ;;  %v3642_v14 = vadd.s32 4294967294, %v287_v55 }
 0x17b   :  { %659 = vrot.lane.b32.xlu1 %v554_v10, %s3218_s11  ;;  %v477_v38 = vsel %vm473_vm15, %v468_v36, %v469_v48  ;;  %v471_v16 = vrot.slane %v3483_v26, 6  ;;  %v558_v60 = vpack.c.bf16 %v3498_v40, %v3483_v26 }
 0x17c   :  { %v476_v1 = vsel %vm473_vm15, %v469_v48, %v470_v45  ;;  %v502_v13 = vsel %vm349_vm0, %v477_v38, 0.0  ;;  %vm351_vm14 = vcmp.ge.s32.totalorder %v3642_v14, 0 }
 0x17d   :  { %v508_v15 = vpack.c.bf16 %v476_v1, %v502_v13  ;;  %v475_v23 = vsel %vm473_vm15, %v470_v45, %v471_v16 }
 0x17e   :  { %v504_v55 = vsel %vm351_vm14, %v475_v23, 0.0 }
 0x1db   :  { %v666_v25 = vpop.permute.xlu0 %665 }
 0x1dc   :  { %v692_v11 = vsel %vm673_vm6, %v555_v24, %v666_v25  ;;  %v474_v25 = vsel %vm473_vm15, %v471_v16, %v472_v22 }
 0x1dd   :  { %917 = vmatprep.mubr.bf16.mxu1 %v692_v11  ;;  %v509_v62 = vpack.c.bf16 %v474_v25, %v504_v55 }
 0x1e1   :  { %v668_v29 = vpop.permute.xlu1 %667 }
 0x1e2   :  { %v654_v17 = vpop.permute.xlu0 %653  ;;  %v696_v37 = vsel %vm673_vm6, %v556_v30, %v668_v29 }
 0x1e3   :  { %v676_v35 = vsel %vm673_vm6, %v506_v34, %v654_v17 }
 0x1e4   :  { %918 = vmatmul.mubr.bf16.vlgmr.msra.gmra.mrb[0].mxu1 %v676_v35 }
 0x1e5   :  { %925 = vmatprep.mubr.bf16.mxu1 %v696_v37  ;;  %v656_v56 = vpop.permute.xlu1 %655 }
 0x1e6   :  { %v670_v19 = vpop.permute.xlu0 %669  ;;  %v680_v51 = vsel %vm673_vm6, %v507_v20, %v656_v56 }
 0x1e7   :  { %v700_v50 = vsel %vm673_vm6, %v557_v9, %v670_v19 }
 0x1e9   :  { %v658_v49 = vpop.permute.xlu1 %657 }
 0x1ea   :  { %v672_v6 = vpop.permute.xlu0 %671  ;;  %v684_v10 = vsel %vm673_vm6, %v508_v15, %v658_v49 }
 0x1eb   :  { %v704_v41 = vsel %vm673_vm6, %v558_v60, %v672_v6 }
 0x1ec   :  { %926 = vmatmul.mubr.bf16.gmra.mrb[4].mxu1 %v680_v51 }
 0x1ed   :  { %933 = vmatprep.mubr.bf16.mxu1 %v700_v50  ;;  %v660_v24 = vpop.permute.xlu1 %659 }
 0x1ee   :  { %v688_v11 = vsel %vm673_vm6, %v509_v62, %v660_v24 }
 0x1f4   :  { %934 = vmatmul.mubr.bf16.gmra.mrb[8].mxu1 %v684_v10 }
 0x1f5   :  { %941 = vmatprep.mubr.bf16.mxu1 %v704_v41 }
 0x1fc   :  { %942 = vmatmul.mubr.bf16.gmra.mrb[12].mxu1 %v688_v11 }
 0x242   :  { %v2792_v44 = vpop.f32.mrb[8].mxu0 }
 0x243   :  { %v984_v12 = vpop.f32.mrb[9].mxu0 }
 0x244   :  { %v2793_v28 = vpop.f32.mrb[10].mxu0 }
 0x245   :  { %v987_v29 = vpop.f32.mrb[11].mxu0 }
 0x24a   :  { %v2796_v34 = vpop.f32.mrb[12].mxu0 }
 0x24b   :  { %v1000_v18 = vpop.f32.mrb[13].mxu0 }
 0x24c   :  { %v3657_v17 = vpop.f32.mrb[14].mxu0 }
 0x24d   :  { %v1003_v30 = vpop.f32.mrb[15].mxu0 }
 0x2b7   :  { %v2634_v35 = vpop.f32.mrb[0].mxu1 }
 0x2b8   :  { %v2635_v37 = vpop.f32.mrb[1].mxu1 }
 0x2b9   :  { %v2636_v36 = vadd.f32 %v2635_v37, %v2634_v35  ;;  %v2637_v39 = vpop.f32.mrb[2].mxu1 }
 0x2ba   :  { %v2638_v48 = vpop.f32.mrb[3].mxu1 }
 0x2bb   :  { %v920_v22 = vadd.f32 %v2636_v36, %v2504_v33  ;;  %v2639_v56 = vadd.f32 %v2638_v48, %v2637_v39 }
 0x2bd   :  { %v3659_v58 = vadd.f32 %v984_v12, %v920_v22  ;;  %v923_v19 = vadd.f32 %v2639_v56, %v2504_v33 }
 0x2bf   :  { %v2529_v20 = vmul.f32 -1.442695, %v3659_v58  ;;  %v3662_v9 = vadd.f32 %v987_v29, %v923_v19  ;;  %v2640_v45 = vpop.f32.mrb[4].mxu1 }
 0x2c0   :  { %v2641_v51 = vpop.f32.mrb[5].mxu1 }
 0x2c1   :  { %v2530_v38 = vmul.f32 -1.442695, %v3662_v9  ;;  %v2642_v50 = vadd.f32 %v2641_v51, %v2640_v45  ;;  %v2643_v1 = vpop.f32.mrb[6].mxu1  ;;  %2927 = vpow2.f32 %v2529_v20 }
 0x2c2   :  { %v2644_v13 = vpop.f32.mrb[7].mxu1 }
 0x2c3   :  { %2929 = vpow2.f32 %v2530_v38  ;;  %v928_v49 = vadd.f32 %v2642_v50, %v2504_v33  ;;  %v2645_v6 = vadd.f32 %v2644_v13, %v2643_v1 }
 0x2c5   :  { %v3665_v15 = vadd.f32 %v2792_v44, %v928_v49  ;;  %v931_v16 = vadd.f32 %v2645_v6, %v2504_v33 }
 0x2c7   :  { %v2531_v60 = vmul.f32 -1.442695, %v3665_v15  ;;  %v3668_v10 = vadd.f32 %v2793_v28, %v931_v16  ;;  %v2646_v23 = vpop.f32.mrb[8].mxu1 }
 0x2c8   :  { %v2647_v41 = vpop.f32.mrb[9].mxu1 }
 0x2c9   :  { %2931 = vpow2.f32 %v2531_v60  ;;  %v2532_v55 = vmul.f32 -1.442695, %v3668_v10  ;;  %v2648_v24 = vadd.f32 %v2647_v41, %v2646_v23  ;;  %v2649_v25 = vpop.f32.mrb[10].mxu1 }
 0x2ca   :  { %v2650_v62 = vpop.f32.mrb[11].mxu1 }
 0x2cb   :  { %2933 = vpow2.f32 %v2532_v55  ;;  %v936_v11 = vadd.f32 %v2648_v24, %v2504_v33  ;;  %v2651_v12 = vadd.f32 %v2650_v62, %v2649_v25  ;;  %v2928_v29 = vpop.eup %2927 }
 0x2cc   :  { %v1039_v48 = vadd.f32 1.0, %v2928_v29 }
 0x2cd   :  { %v2930_v35 = vpop.eup %2929  ;;  %v3671_v44 = vadd.f32 %v1000_v18, %v936_v11  ;;  %v939_v37 = vadd.f32 %v2651_v12, %v2504_v33 }
 0x2ce   :  { %v1040_v36 = vadd.f32 1.0, %v2930_v35 }
 0x2cf   :  { %v3673_v39 = vadd.f32 %v1003_v30, %v939_v37  ;;  %v2652_v28 = vpop.f32.mrb[12].mxu1  ;;  %v2533_v6 = vmul.f32 -1.442695, %v3671_v44  ;;  %v2883_v37 = vld [vmem:[#allocation8 + $0x120] sm:$0xff]  }
 0x2d0   :  { %2935 = vrcp.f32 %v1040_v36  ;;  %v2653_v22 = vpop.f32.mrb[13].mxu1  ;;  %2798 = vmatprep.subr.bf16.mxu1 %v2883_v37 }
 0x2d1   :  { %v2534_v56 = vmul.f32 -1.442695, %v3673_v39  ;;  %v2654_v19 = vadd.f32 %v2653_v22, %v2652_v28  ;;  %v2655_v20 = vpop.f32.mrb[14].mxu1  ;;  %2799 = vmatpush3.bf16.msra.mxu1 %v2883_v37  ;;  %v2884_v28 = vld [vmem:[#allocation8 + $0x128] sm:$0xff]   ;;  %v2885_v22 = vld [vmem:[#allocation8 + $0x130] sm:$0xff]  }
 0x2d2   :  { %v2656_v45 = vpop.f32.mrb[15].mxu1  ;;  %2800 = vmatprep.subr.bf16.mxu1 %v2884_v28 }
 0x2d3   :  { %v2932_v51 = vpop.eup %2931  ;;  %2937 = vpow2.f32 %v2534_v56  ;;  %v944_v38 = vadd.f32 %v2654_v19, %v2504_v33  ;;  %v2657_v50 = vadd.f32 %v2656_v45, %v2655_v20  ;;  %v2886_v56 = vld [vmem:[#allocation8 + $0x138] sm:$0xff]   ;;  %v2887_v45 = vld [vmem:[#allocation8 + $0xe0] sm:$0xff]  }
 0x2d4   :  { %2939 = vrcp.f32 %v1039_v48  ;;  %v1041_v18 = vadd.f32 1.0, %v2932_v51  ;;  %v2888_v51 = vld [vmem:[#allocation8 + $0xa0] sm:$0xff]   ;;  %2666 = vmatprep.subr.bf16.mxu0 %v2887_v45 }
 0x2d5   :  { %v2934_v1 = vpop.eup %2933  ;;  %v3676_v13 = vadd.f32 %v2796_v34, %v944_v38  ;;  %v947_v30 = vadd.f32 %v2657_v50, %v2504_v33  ;;  %2801 = vmatpush3.bf16.msra.mxu1 %v2884_v28  ;;  %v2889_v38 = vld [vmem:[#allocation8 + $0xe8] sm:$0xff]   ;;  %2667 = vmatpush3.bf16.msra.mxu0 %v2888_v51  ;;  %v2900_v51 = vld [vmem:[#allocation8 + $0xd0] sm:$0xff]  }
 0x2d6   :  { %2941 = vrcp.f32 %v1041_v18  ;;  %v1042_v49 = vadd.f32 1.0, %v2934_v1  ;;  %2802 = vmatprep.subr.bf16.mxu1 %v2885_v22  ;;  %v2890_v50 = vld [vmem:[#allocation8 + $0xa8] sm:$0xff]   ;;  %2668 = vmatprep.subr.bf16.mxu0 %v2889_v38  ;;  %v2891_v18 = vld [vmem:[#allocation8 + $0xf0] sm:$0xff]  }
 0x2d7   :  { %v3680_v16 = vadd.f32 %v3657_v17, %v947_v30  ;;  %v2535_v41 = vmul.f32 -1.442695, %v3676_v13  ;;  %v2892_v1 = vld [vmem:[#allocation8 + $0xb0] sm:$0xff]   ;;  %v2893_v30 = vld [vmem:[#allocation8 + $0xf8] sm:$0xff]  }
 0x2d8   :  { %2943 = vrcp.f32 %v1042_v49 }
 0x2d9   :  { %v2536_v60 = vmul.f32 -1.442695, %v3680_v16  ;;  %2945 = vpow2.f32 %v2533_v6  ;;  %2803 = vmatpush3.bf16.msra.mxu1 %v2885_v22  ;;  %2669 = vmatpush3.bf16.msra.mxu0 %v2890_v50 }
 0x2da   :  { %v2936_v23 = vpop.eup %2935  ;;  %2804 = vmatprep.subr.bf16.mxu1 %v2886_v56  ;;  %2670 = vmatprep.subr.bf16.mxu0 %v2891_v18  ;;  %v2901_v18 = vld [vmem:[#allocation8 + $0x118] sm:$0xff]  }
 0x2db   :  { %2947 = vpow2.f32 %v2536_v60  ;;  %1073 = vrot.lane.b32.xlu0 %v2936_v23, %s3218_s11 }
 0x2dc   :  { %2949 = vpow2.f32 %v2535_v41 }
 0x2dd   :  { %v2938_v34 = vpop.eup %2937  ;;  %2805 = vmatpush3.bf16.msra.mxu1 %v2886_v56  ;;  %2671 = vmatpush3.bf16.msra.mxu0 %v2892_v1 }
 0x2de   :  { %v2940_v55 = vpop.eup %2939  ;;  %v1044_v33 = vadd.f32 1.0, %v2938_v34  ;;  %2672 = vmatprep.subr.bf16.mxu0 %v2893_v30  ;;  %v2894_v34 = vld [vmem:[#allocation8 + $0xb8] sm:$0xff]  }
 0x2df   :  { %1071 = vrot.lane.b32.xlu0 %v2940_v55, %s3218_s11  ;;  %v2902_v30 = vld [vmem:[#allocation8 + $0xd8] sm:$0xff]  }
 0x2e0   :  { %v2942_v24 = vpop.eup %2941  ;;  %2951 = vrcp.f32 %v1044_v33 }
 0x2e1   :  { %1075 = vrot.lane.b32.xlu1 %v2942_v24, %s3218_s11  ;;  %2673 = vmatpush3.bf16.msra.mxu0 %v2894_v34 }
 0x2e2   :  { %v2944_v17 = vpop.eup %2943 }
 0x2e3   :  { %1077 = vrot.lane.b32.xlu0 %v2944_v17, %s3218_s11  ;;  %v2946_v25 = vpop.eup %2945  ;;  %v2895_v17 = vld [vmem:[#allocation8 + $0x100] sm:$0xff]  }
 0x2e4   :  { %v1043_v12 = vadd.f32 1.0, %v2946_v25  ;;  %v2896_v25 = vld [vmem:[#allocation8 + $0xc0] sm:$0xff]   ;;  %2674 = vmatprep.subr.bf16.mxu0 %v2895_v17 }
 0x2e5   :  { %v2948_v62 = vpop.eup %2947  ;;  %2675 = vmatpush3.bf16.msra.mxu0 %v2896_v25 }
 0x2e6   :  { %v1046_v11 = vadd.f32 1.0, %v2948_v62  ;;  %v2950_v29 = vpop.eup %2949  ;;  %v2897_v62 = vld [vmem:[#allocation8 + $0x108] sm:$0xff]  }
 0x2e7   :  { %v1045_v36 = vadd.f32 1.0, %v2950_v29  ;;  %2676 = vmatprep.subr.bf16.mxu0 %v2897_v62 }
 0x2e8   :  { %2953 = vrcp.f32 %v1046_v11 }
 0x2e9   :  { %2955 = vrcp.f32 %v1043_v12 }
 0x2ea   :  { %v2952_v35 = vpop.eup %2951  ;;  %2957 = vrcp.f32 %v1045_v36 }
 0x2eb   :  { %1081 = vrot.lane.b32.xlu0 %v2952_v35, %s3218_s11 }
 0x2f2   :  { %v2954_v48 = vpop.eup %2953 }
 0x2f3   :  { %1085 = vrot.lane.b32.xlu1 %v2954_v48, %s3218_s11  ;;  %v2956_v19 = vpop.eup %2955 }
 0x2f4   :  { %v2958_v20 = vpop.eup %2957 }
 0x2f7   :  { %1079 = vrot.lane.b32.xlu1 %v2956_v19, %s3218_s11 }
 0x2fb   :  { %1083 = vrot.lane.b32.xlu1 %v2958_v20, %s3218_s11 }
 0x34d   :  { %v1074_v49 = vpop.permute.xlu0 %1073 }
 0x34e   :  { %v1096_v6 = vmul.f32 %v1074_v49, %v3662_v9 }
 0x350   :  { %v1104_v23 = vadd.f32 %v1096_v6, %v3443_v5 }
 0x351   :  { %v1072_v60 = vpop.permute.xlu0 %1071 }
 0x352   :  { %v1095_v41 = vmul.f32 %v1072_v60, %v3659_v58  ;;  %v3697_v11 = vmul.f32 0.70710677, %v1104_v23  ;;  %v2898_v58 = vld [vmem:[#allocation8 + $0xc8] sm:$0xff]  }
 0x353   :  { %v1076_v55 = vpop.permute.xlu1 %1075  ;;  %2677 = vmatpush3.bf16.msra.mxu0 %v2898_v58 }
 0x354   :  { %v1103_v33 = vadd.f32 %v1095_v41, %v3426_v61  ;;  %v1097_v24 = vmul.f32 %v1076_v55, %v3665_v15  ;;  %v2899_v15 = vld [vmem:[#allocation8 + $0x110] sm:$0xff]   ;;  %v1208_v35 = vrot.slane %v3697_v11, 2  ;;  %v1180_v36 = vrot.slane %v3697_v11, 1 }
 0x355   :  { %2678 = vmatprep.subr.bf16.mxu0 %v2899_v15  ;;  %v1148_v62 = vrot.slane %v3697_v11, 7 }
 0x356   :  { %v3699_v12 = vmul.f32 0.70710677, %v1103_v33  ;;  %v1105_v9 = vadd.f32 %v1097_v24, %v3417_v57  ;;  %v1078_v57 = vpop.permute.xlu0 %1077 }
 0x357   :  { %v1098_v1 = vmul.f32 %v1078_v57, %v3668_v10  ;;  %2679 = vmatpush3.bf16.msra.mxu0 %v2900_v51 }
 0x358   :  { %v3702_v5 = vmul.f32 0.70710677, %v1105_v9  ;;  %v1207_v29 = vrot.slane %v3699_v12, 2  ;;  %v1179_v61 = vrot.slane %v3699_v12, 1  ;;  %2680 = vmatprep.subr.bf16.mxu0 %v2901_v18  ;;  %v1147_v24 = vrot.slane %v3699_v12, 7 }
 0x359   :  { %v1106_v6 = vadd.f32 %v1098_v1, %v3432_v0 }
 0x35a   :  { %v1209_v37 = vrot.slane %v3702_v5, 2  ;;  %v1181_v28 = vrot.slane %v3702_v5, 1  ;;  %v1221_v56 = vsel %vm612_vm1, %v1207_v29, %v1208_v35  ;;  %v1193_v20 = vsel %vm567_vm2, %v1179_v61, %v1180_v36 }
 0x35b   :  { %2681 = vmatpush3.bf16.msra.mxu0 %v2902_v30  ;;  %v3732_v34 = vmul.f32 0.70710677, %v1106_v6  ;;  %v1149_v0 = vrot.slane %v3702_v5, 7 }
 0x35c   :  { %v1220_v48 = vsel %vm612_vm1, %v1208_v35, %v1209_v37  ;;  %v1192_v22 = vsel %vm567_vm2, %v1180_v36, %v1181_v28 }
 0x35d   :  { %v1224_v19 = vsel %vm450_vm4, %v1220_v48, 0.0  ;;  %v1196_v45 = vsel %vm418_vm5, %v1192_v22, 0.0  ;;  %v1082_v49 = vpop.permute.xlu0 %1081  ;;  %v1150_v9 = vrot.slane %v3732_v34, 7  ;;  %v1160_v48 = vsel %vm518_vm3, %v1148_v62, %v1149_v0 }
 0x35e   :  { %v1231_v38 = vpack.c.bf16 %v1224_v19, %v1221_v56  ;;  %v1203_v50 = vpack.c.bf16 %v1196_v45, %v1193_v20  ;;  %v1100_v60 = vmul.f32 %v1082_v49, %v3673_v39  ;;  %v1210_v39 = vrot.slane %v3732_v34, 2 }
 0x35f   :  { %v1159_v19 = vsel %vm518_vm3, %v1149_v0, %v1150_v9 }
 0x360   :  { %2806 = vmatprep.mubr.msk.bf16.mxu1 %vm673_vm6, %v1231_v38  ;;  %1251 = vrot.lane.b32.xlu0 %v1203_v50, %s3218_s11  ;;  %v1108_v55 = vadd.f32 %v1100_v60, %v3506_v52  ;;  %v1219_v22 = vsel %vm612_vm1, %v1209_v37, %v1210_v39  ;;  %v1165_v38 = vsel %vm379_vm7, %v1160_v48, 0.0 }
 0x362   :  { %v3747_v58 = vmul.f32 0.70710677, %v1108_v55 }
 0x364   :  { %v1212_v50 = vrot.slane %v3747_v58, 2  ;;  %v1184_v37 = vrot.slane %v3747_v58, 1  ;;  %v1152_v30 = vrot.slane %v3747_v58, 7 }
 0x365   :  { %v1086_v23 = vpop.permute.xlu1 %1085 }
 0x366   :  { %v1102_v41 = vmul.f32 %v1086_v23, %v3680_v16  ;;  %v1182_v16 = vrot.slane %v3732_v34, 1 }
 0x368   :  { %v1110_v10 = vadd.f32 %v1102_v41, %v3498_v40  ;;  %v1191_v56 = vsel %vm567_vm2, %v1181_v28, %v1182_v16 }
 0x369   :  { %v1080_v33 = vpop.permute.xlu1 %1079 }
 0x36a   :  { %v3737_v17 = vmul.f32 0.70710677, %v1110_v10  ;;  %v1099_v25 = vmul.f32 %v1080_v33, %v3671_v44  ;;  %v1161_v44 = vsel %vm518_vm3, %v1147_v24, %v1148_v62 }
 0x36c   :  { %v1107_v40 = vadd.f32 %v1099_v25, %v3492_v32  ;;  %v1154_v52 = vrot.slane %v3737_v17, 7  ;;  %v1214_v60 = vrot.slane %v3737_v17, 2  ;;  %v1186_v23 = vrot.slane %v3737_v17, 1 }
 0x36d   :  { %v1084_v15 = vpop.permute.xlu1 %1083 }
 0x36e   :  { %v3751_v35 = vmul.f32 0.70710677, %v1107_v40  ;;  %v1101_v36 = vmul.f32 %v1084_v15, %v3676_v13  ;;  %v1162_v57 = vsel %vm518_vm3, %v1154_v52, %v1147_v24  ;;  %v1172_v24 = vpack.c.bf16 %v1159_v19, %v1165_v38 }
 0x36f   :  { %v1163_v32 = vsel %vm377_vm10, %v1162_v57, 0.0 }
 0x370   :  { %v1211_v13 = vrot.slane %v3751_v35, 2  ;;  %v1109_v20 = vadd.f32 %v1101_v36, %v3483_v26  ;;  %v1171_v45 = vpack.c.bf16 %v1161_v44, %v1163_v32  ;;  %v1183_v51 = vrot.slane %v3751_v35, 1 }
 0x371   :  { %v1151_v18 = vrot.slane %v3751_v35, 7  ;;  %v1222_v32 = vsel %vm612_vm1, %v1214_v60, %v1207_v29 }
 0x372   :  { %v3774_v28 = vmul.f32 0.70710677, %v1109_v20  ;;  %1239 = vrot.lane.b32.xlu1 %v1171_v45, %s3218_s11  ;;  %v1218_v1 = vsel %vm612_vm1, %v1210_v39, %v1211_v13  ;;  %v1190_v26 = vsel %vm567_vm2, %v1182_v16, %v1183_v51  ;;  %v1189_v44 = vsel %vm567_vm2, %v1183_v51, %v1184_v37 }
 0x373   :  { %v1226_v49 = vsel %vm452_vm9, %v1218_v1, 0.0  ;;  %v1198_v6 = vsel %vm420_vm8, %v1190_v26, 0.0  ;;  %v1158_v25 = vsel %vm518_vm3, %v1150_v9, %v1151_v18  ;;  %v1157_v16 = vsel %vm518_vm3, %v1151_v18, %v1152_v30 }
 0x374   :  { %v1232_v41 = vpack.c.bf16 %v1226_v49, %v1219_v22  ;;  %v1204_v10 = vpack.c.bf16 %v1198_v6, %v1191_v56  ;;  %v1213_v55 = vrot.slane %v3774_v28, 2  ;;  %v1185_v33 = vrot.slane %v3774_v28, 1 }
 0x375   :  { %v1153_v0 = vrot.slane %v3774_v28, 7  ;;  %v1167_v40 = vsel %vm4224_vm13, %v1158_v25, 0.0  ;;  %v1217_v9 = vsel %vm612_vm1, %v1211_v13, %v1212_v50  ;;  %v1194_v22 = vsel %vm567_vm2, %v1186_v23, %v1179_v61 }
 0x376   :  { %2807 = vmatmul.mubr.msk.bf16.vlgmr.msra.gmra.mrb[16].mxu1 %vm673_vm6, %v1232_v41  ;;  %1253 = vrot.lane.b32.xlu0 %v1204_v10, %s3218_s11  ;;  %v1216_v39 = vsel %vm612_vm1, %v1212_v50, %v1213_v55  ;;  %v1188_v62 = vsel %vm567_vm2, %v1184_v37, %v1185_v33  ;;  %v1173_v56 = vpack.c.bf16 %v1157_v16, %v1167_v40  ;;  %vm4227_vm13 = vcmp.lt.s32.totalorder %v3448_v7, 16 }
 0x377   :  { %1241 = vrot.lane.b32.xlu1 %v1172_v24, %s3218_s11  ;;  %v1228_v15 = vsel %vm4223_vm11, %v1216_v39, 0.0  ;;  %v1200_v36 = vsel %vm4222_vm12, %v1188_v62, 0.0  ;;  %v1215_v19 = vsel %vm612_vm1, %v1213_v55, %v1214_v60  ;;  %v1187_v13 = vsel %vm567_vm2, %v1185_v33, %v1186_v23 }
 0x378   :  { %v1233_v57 = vpack.c.bf16 %v1228_v15, %v1217_v9  ;;  %v1205_v48 = vpack.c.bf16 %v1200_v36, %v1189_v44  ;;  %v1156_v20 = vsel %vm518_vm3, %v1152_v30, %v1153_v0  ;;  %v1155_v29 = vsel %vm518_vm3, %v1153_v0, %v1154_v52 }
 0x379   :  { %vm4225_vm12 = vcmp.ge.s32.totalorder %v3452_v8, 0  ;;  %vm4226_vm11 = vcmp.lt.s32.totalorder %v3440_v4, 16  ;;  %v1202_v51 = vsel %vm4227_vm13, %v1194_v22, 0.0  ;;  %v1175_v52 = vpack.c.bf16 %v3697_v11, %v3699_v12 }
 0x37a   :  { %2810 = vmatprep.mubr.msk.bf16.mxu1 %vm673_vm6, %v1233_v57  ;;  %1255 = vrot.lane.b32.xlu0 %v1205_v48, %s3218_s11  ;;  %v1169_v61 = vsel %vm4225_vm12, %v1156_v20, 0.0  ;;  %v1230_v45 = vsel %vm4226_vm11, %v1222_v32, 0.0  ;;  %v1206_v50 = vpack.c.bf16 %v1202_v51, %v1187_v13  ;;  %v1126_v26 = vrot.slane %v3737_v17, 6 }
 0x37b   :  { %1243 = vrot.lane.b32.xlu1 %v1173_v56, %s3218_s11  ;;  %v1234_v38 = vpack.c.bf16 %v1230_v45, %v1215_v19  ;;  %v1174_v37 = vpack.c.bf16 %v1155_v29, %v1169_v61  ;;  %v1119_v30 = vrot.slane %v3699_v12, 6  ;;  %v1120_v6 = vrot.slane %v3697_v11, 6 }
 0x37c   :  { %vm4228_vm11 = vcmp.ge.s32.totalorder %v3590_v21, 0  ;;  %v1121_v23 = vrot.slane %v3702_v5, 6  ;;  %v1122_v33 = vrot.slane %v3732_v34, 6  ;;  %v1176_v0 = vpack.c.bf16 %v3732_v34, %v3702_v5 }
 0x37d   :  { %v1134_v49 = vsel %vm473_vm15, %v1126_v26, %v1119_v30  ;;  %v1133_v41 = vsel %vm473_vm15, %v1119_v30, %v1120_v6  ;;  %vm4229_vm12 = vcmp.ge.s32.totalorder %v3606_v27, 0  ;;  %v1123_v9 = vrot.slane %v3751_v35, 6 }
 0x37e   :  { %2811 = vmatmul.mubr.msk.bf16.gmra.mrb[20].mxu1 %vm673_vm6, %v1234_v38  ;;  %1257 = vrot.lane.b32.xlu0 %v1206_v50, %s3218_s11  ;;  %v1135_v60 = vsel %vm4228_vm11, %v1134_v49, 0.0  ;;  %v1132_v25 = vsel %vm473_vm15, %v1120_v6, %v1121_v23  ;;  %v1131_v62 = vsel %vm473_vm15, %v1121_v23, %v1122_v33  ;;  %v1177_v36 = vpack.c.bf16 %v3747_v58, %v3751_v35 }
 0x37f   :  { %1245 = vrot.lane.b32.xlu1 %v1174_v37, %s3218_s11  ;;  %v1143_v10 = vpack.c.bf16 %v1133_v41, %v1135_v60  ;;  %v1137_v16 = vsel %vm4229_vm12, %v1132_v25, 0.0  ;;  %v1130_v22 = vsel %vm473_vm15, %v1122_v33, %v1123_v9  ;;  %v1124_v56 = vrot.slane %v3747_v58, 6 }
 0x380   :  { %v1144_v44 = vpack.c.bf16 %v1131_v62, %v1137_v16  ;;  %v1139_v13 = vsel %vm349_vm0, %v1130_v22, 0.0  ;;  %v1125_v20 = vrot.slane %v3774_v28, 6  ;;  %v1178_v51 = vpack.c.bf16 %v3737_v17, %v3774_v28 }
 0x381   :  { %v1129_v19 = vsel %vm473_vm15, %v1123_v9, %v1124_v56 }
 0x382   :  { %v1145_v45 = vpack.c.bf16 %v1129_v19, %v1139_v13  ;;  %v1128_v50 = vsel %vm473_vm15, %v1124_v56, %v1125_v20 }
 0x3d2   :  { %v1252_v18 = vpop.permute.xlu0 %1251 }
 0x3d3   :  { %v1277_v1 = vsel %vm673_vm6, %v1175_v52, %v1252_v18  ;;  %v1127_v52 = vsel %vm473_vm15, %v1125_v20, %v1126_v26  ;;  %v1141_v18 = vsel %vm351_vm14, %v1128_v50, 0.0 }
 0x3d4   :  { %1504 = vmatprep.mubr.bf16.mxu0 %v1277_v1  ;;  %v1146_v30 = vpack.c.bf16 %v1127_v52, %v1141_v18 }
 0x3e4   :  { %v1240_v55 = vpop.permute.xlu1 %1239 }
 0x3e5   :  { %v1261_v24 = vsel %vm673_vm6, %v1143_v10, %v1240_v55 }
 0x3e6   :  { %1505 = vmatmul.mubr.bf16.vlgmr.msra.gmra.mrb[16].mxu0 %v1261_v24 }
 0x3e8   :  { %v1254_v39 = vpop.permute.xlu0 %1253 }
 0x3e9   :  { %v1281_v40 = vsel %vm673_vm6, %v1176_v0, %v1254_v39  ;;  %v1242_v15 = vpop.permute.xlu1 %1241  ;;  %v2537_v0 = vld [vmem:[#allocation10 + $0x1] ss:$0 sm:$0xff] }
 0x3ea   :  { %1512 = vmatprep.mubr.bf16.mxu0 %v1281_v40  ;;  %v1265_v48 = vsel %vm673_vm6, %v1144_v44, %v1242_v15 }
 0x3ec   :  { %v1256_v57 = vpop.permute.xlu0 %1255 }
 0x3ed   :  { %v1285_v32 = vsel %vm673_vm6, %v1177_v36, %v1256_v57  ;;  %v1244_v29 = vpop.permute.xlu1 %1243 }
 0x3ee   :  { %1513 = vmatmul.mubr.bf16.gmra.mrb[20].mxu0 %v1265_v48  ;;  %v1269_v38 = vsel %vm673_vm6, %v1145_v45, %v1244_v29 }
 0x3ef   :  { %1520 = vmatprep.mubr.bf16.mxu0 %v1285_v32 }
 0x3f0   :  { %v1258_v61 = vpop.permute.xlu0 %1257 }
 0x3f1   :  { %v1289_v37 = vsel %vm673_vm6, %v1178_v51, %v1258_v61  ;;  %v1246_v1 = vpop.permute.xlu1 %1245 }
 0x3f2   :  { %v1273_v49 = vsel %vm673_vm6, %v1146_v30, %v1246_v1 }
 0x3f6   :  { %1521 = vmatmul.mubr.bf16.gmra.mrb[24].mxu0 %v1269_v38 }
 0x3f7   :  { %1528 = vmatprep.mubr.bf16.mxu0 %v1289_v37 }
 0x3fe   :  { %1529 = vmatmul.mubr.bf16.gmra.mrb[28].mxu0 %v1273_v49 }
 0x449   :  { %v2808_v6 = vpop.f32.mrb[16].mxu1 }
 0x44a   :  { %v1571_v60 = vpop.f32.mrb[17].mxu1 }
 0x44b   :  { %v2809_v23 = vpop.f32.mrb[18].mxu1 }
 0x44c   :  { %v1574_v41 = vpop.f32.mrb[19].mxu1 }
 0x451   :  { %v2812_v10 = vpop.f32.mrb[20].mxu1 }
 0x452   :  { %v1587_v55 = vpop.f32.mrb[21].mxu1 }
 0x453   :  { %v3888_v33 = vpop.f32.mrb[22].mxu1 }
 0x454   :  { %v1590_v24 = vpop.f32.mrb[23].mxu1 }
 0x4b9   :  { %v2682_v25 = vpop.f32.mrb[16].mxu0 }
 0x4ba   :  { %v2683_v26 = vpop.f32.mrb[17].mxu0 }
 0x4bb   :  { %v2684_v39 = vadd.f32 %v2683_v26, %v2682_v25  ;;  %v2685_v62 = vpop.f32.mrb[18].mxu0 }
 0x4bc   :  { %v2686_v16 = vpop.f32.mrb[19].mxu0 }
 0x4bd   :  { %v1507_v40 = vadd.f32 %v2684_v39, %v2537_v0  ;;  %v2687_v9 = vadd.f32 %v2686_v16, %v2685_v62 }
 0x4bf   :  { %v3890_v15 = vadd.f32 %v1571_v60, %v1507_v40  ;;  %v1510_v44 = vadd.f32 %v2687_v9, %v2537_v0 }
 0x4c1   :  { %v2562_v36 = vmul.f32 -1.442695, %v3890_v15  ;;  %v3893_v57 = vadd.f32 %v1574_v41, %v1510_v44  ;;  %v2688_v48 = vpop.f32.mrb[20].mxu0 }
 0x4c2   :  { %v2689_v32 = vpop.f32.mrb[21].mxu0 }
 0x4c3   :  { %v2563_v22 = vmul.f32 -1.442695, %v3893_v57  ;;  %v2690_v56 = vadd.f32 %v2689_v32, %v2688_v48  ;;  %v2691_v19 = vpop.f32.mrb[22].mxu0  ;;  %2959 = vpow2.f32 %v2562_v36 }
 0x4c4   :  { %v2692_v13 = vpop.f32.mrb[23].mxu0 }
 0x4c5   :  { %2961 = vpow2.f32 %v2563_v22  ;;  %v1515_v20 = vadd.f32 %v2690_v56, %v2537_v0  ;;  %v2693_v29 = vadd.f32 %v2692_v13, %v2691_v19 }
 0x4c7   :  { %v3896_v61 = vadd.f32 %v2808_v6, %v1515_v20  ;;  %v1518_v45 = vadd.f32 %v2693_v29, %v2537_v0 }
 0x4c9   :  { %v2564_v51 = vmul.f32 -1.442695, %v3896_v61  ;;  %v3899_v38 = vadd.f32 %v2809_v23, %v1518_v45  ;;  %v2694_v50 = vpop.f32.mrb[24].mxu0 }
 0x4ca   :  { %v2695_v37 = vpop.f32.mrb[25].mxu0 }
 0x4cb   :  { %2963 = vpow2.f32 %v2564_v51  ;;  %v2565_v52 = vmul.f32 -1.442695, %v3899_v38  ;;  %v2696_v18 = vadd.f32 %v2695_v37, %v2694_v50  ;;  %v2697_v1 = vpop.f32.mrb[26].mxu0 }
 0x4cc   :  { %v2698_v30 = vpop.f32.mrb[27].mxu0 }
 0x4cd   :  { %2965 = vpow2.f32 %v2565_v52  ;;  %v1523_v49 = vadd.f32 %v2696_v18, %v2537_v0  ;;  %v2699_v60 = vadd.f32 %v2698_v30, %v2697_v1  ;;  %v2960_v41 = vpop.eup %2959 }
 0x4ce   :  { %v1626_v16 = vadd.f32 1.0, %v2960_v41 }
 0x4cf   :  { %v2962_v25 = vpop.eup %2961  ;;  %v3902_v6 = vadd.f32 %v1587_v55, %v1523_v49  ;;  %v1526_v26 = vadd.f32 %v2699_v60, %v2537_v0 }
 0x4d0   :  { %v1627_v39 = vadd.f32 1.0, %v2962_v25 }
 0x4d1   :  { %v3904_v62 = vadd.f32 %v1590_v24, %v1526_v26  ;;  %v2700_v23 = vpop.f32.mrb[28].mxu0  ;;  %v2566_v29 = vmul.f32 -1.442695, %v3902_v6  ;;  %v2903_v26 = vld [vmem:[#allocation8 + $0x1c0] sm:$0xff]  }
 0x4d2   :  { %2967 = vrcp.f32 %v1627_v39  ;;  %v2701_v40 = vpop.f32.mrb[29].mxu0  ;;  %2814 = vmatprep.subr.bf16.mxu1 %v2903_v26 }
 0x4d3   :  { %v2567_v9 = vmul.f32 -1.442695, %v3904_v62  ;;  %v2702_v44 = vadd.f32 %v2701_v40, %v2700_v23  ;;  %v2703_v36 = vpop.f32.mrb[30].mxu0  ;;  %2815 = vmatpush3.bf16.msra.mxu1 %v2903_v26  ;;  %v2904_v23 = vld [vmem:[#allocation8 + $0x1c8] sm:$0xff]   ;;  %v2905_v40 = vld [vmem:[#allocation8 + $0x1d0] sm:$0xff]  }
 0x4d4   :  { %v2704_v48 = vpop.f32.mrb[31].mxu0  ;;  %2816 = vmatprep.subr.bf16.mxu1 %v2904_v23 }
 0x4d5   :  { %v2964_v32 = vpop.eup %2963  ;;  %2969 = vpow2.f32 %v2567_v9  ;;  %v1531_v22 = vadd.f32 %v2702_v44, %v2537_v0  ;;  %v2705_v56 = vadd.f32 %v2704_v48, %v2703_v36  ;;  %v2906_v9 = vld [vmem:[#allocation8 + $0x1d8] sm:$0xff]   ;;  %v2907_v48 = vld [vmem:[#allocation8 + $0x180] sm:$0xff]  }
 0x4d6   :  { %2971 = vrcp.f32 %v1626_v16  ;;  %v1628_v55 = vadd.f32 1.0, %v2964_v32  ;;  %v2908_v32 = vld [vmem:[#allocation8 + $0x140] sm:$0xff]   ;;  %2714 = vmatprep.subr.bf16.mxu0 %v2907_v48 }
 0x4d7   :  { %v2966_v19 = vpop.eup %2965  ;;  %v3907_v13 = vadd.f32 %v2812_v10, %v1531_v22  ;;  %v1534_v24 = vadd.f32 %v2705_v56, %v2537_v0  ;;  %2817 = vmatpush3.bf16.msra.mxu1 %v2904_v23  ;;  %v2909_v22 = vld [vmem:[#allocation8 + $0x188] sm:$0xff]   ;;  %2715 = vmatpush3.bf16.msra.mxu0 %v2908_v32 }
 0x4d8   :  { %2973 = vrcp.f32 %v1628_v55  ;;  %v1629_v20 = vadd.f32 1.0, %v2966_v19  ;;  %2818 = vmatprep.subr.bf16.mxu1 %v2905_v40  ;;  %v2910_v56 = vld [vmem:[#allocation8 + $0x148] sm:$0xff]   ;;  %2716 = vmatprep.subr.bf16.mxu0 %v2909_v22  ;;  %v2911_v55 = vld [vmem:[#allocation8 + $0x190] sm:$0xff]   ;;  %v2921_v22 = vld [vmem:[#allocation8 + $0x1b8] sm:$0xff]  }
 0x4d9   :  { %v3911_v45 = vadd.f32 %v3888_v33, %v1534_v24  ;;  %v2568_v37 = vmul.f32 -1.442695, %v3907_v13  ;;  %v2912_v19 = vld [vmem:[#allocation8 + $0x150] sm:$0xff]   ;;  %v2913_v24 = vld [vmem:[#allocation8 + $0x198] sm:$0xff]  }
 0x4da   :  { %2975 = vrcp.f32 %v1629_v20  ;;  %v2914_v20 = vld [vmem:[#allocation8 + $0x158] sm:$0xff]  }
 0x4db   :  { %v2569_v51 = vmul.f32 -1.442695, %v3911_v45  ;;  %2977 = vpow2.f32 %v2566_v29  ;;  %2819 = vmatpush3.bf16.msra.mxu1 %v2905_v40  ;;  %2717 = vmatpush3.bf16.msra.mxu0 %v2910_v56 }
 0x4dc   :  { %v2968_v50 = vpop.eup %2967  ;;  %2820 = vmatprep.subr.bf16.mxu1 %v2906_v9  ;;  %2718 = vmatprep.subr.bf16.mxu0 %v2911_v55 }
 0x4dd   :  { %2979 = vpow2.f32 %v2569_v51  ;;  %1660 = vrot.lane.b32.xlu0 %v2968_v50, %s3218_s11 }
 0x4de   :  { %2981 = vpow2.f32 %v2568_v37 }
 0x4df   :  { %v2970_v10 = vpop.eup %2969  ;;  %2821 = vmatpush3.bf16.msra.mxu1 %v2906_v9  ;;  %2719 = vmatpush3.bf16.msra.mxu0 %v2912_v19 }
 0x4e0   :  { %v2972_v52 = vpop.eup %2971  ;;  %v1631_v0 = vadd.f32 1.0, %v2970_v10  ;;  %2720 = vmatprep.subr.bf16.mxu0 %v2913_v24  ;;  %v2922_v24 = vld [vmem:[#allocation8 + $0x178] sm:$0xff]  }
 0x4e1   :  { %1658 = vrot.lane.b32.xlu0 %v2972_v52, %s3218_s11 }
 0x4e2   :  { %v2974_v18 = vpop.eup %2973  ;;  %2983 = vrcp.f32 %v1631_v0 }
 0x4e3   :  { %1662 = vrot.lane.b32.xlu1 %v2974_v18, %s3218_s11  ;;  %2721 = vmatpush3.bf16.msra.mxu0 %v2914_v20 }
 0x4e4   :  { %v2976_v33 = vpop.eup %2975 }
 0x4e5   :  { %1664 = vrot.lane.b32.xlu0 %v2976_v33, %s3218_s11  ;;  %v2978_v1 = vpop.eup %2977  ;;  %v2915_v33 = vld [vmem:[#allocation8 + $0x1a0] sm:$0xff]  }
 0x4e6   :  { %v1630_v60 = vadd.f32 1.0, %v2978_v1  ;;  %v2916_v1 = vld [vmem:[#allocation8 + $0x160] sm:$0xff]   ;;  %2722 = vmatprep.subr.bf16.mxu0 %v2915_v33 }
 0x4e7   :  { %v2980_v30 = vpop.eup %2979  ;;  %2723 = vmatpush3.bf16.msra.mxu0 %v2916_v1 }
 0x4e8   :  { %v1633_v49 = vadd.f32 1.0, %v2980_v30  ;;  %v2982_v41 = vpop.eup %2981  ;;  %v2917_v30 = vld [vmem:[#allocation8 + $0x1a8] sm:$0xff]  }
 0x4e9   :  { %v1632_v39 = vadd.f32 1.0, %v2982_v41  ;;  %2724 = vmatprep.subr.bf16.mxu0 %v2917_v30 }
 0x4ea   :  { %2985 = vrcp.f32 %v1633_v49 }
 0x4eb   :  { %2987 = vrcp.f32 %v1630_v60 }
 0x4ec   :  { %v2984_v25 = vpop.eup %2983  ;;  %2989 = vrcp.f32 %v1632_v39 }
 0x4ed   :  { %1668 = vrot.lane.b32.xlu0 %v2984_v25, %s3218_s11 }
 0x4f4   :  { %v2986_v16 = vpop.eup %2985 }
 0x4f5   :  { %1672 = vrot.lane.b32.xlu1 %v2986_v16, %s3218_s11  ;;  %v2988_v44 = vpop.eup %2987 }
 0x4f6   :  { %v2990_v36 = vpop.eup %2989 }
 0x4f9   :  { %1666 = vrot.lane.b32.xlu1 %v2988_v44, %s3218_s11 }
 0x4fd   :  { %1670 = vrot.lane.b32.xlu1 %v2990_v36, %s3218_s11 }
 0x54f   :  { %v1661_v29 = vpop.permute.xlu0 %1660 }
 0x550   :  { %v1683_v51 = vmul.f32 %v1661_v29, %v3893_v57  ;;  %v2918_v57 = vld [vmem:[#allocation8 + $0x168] sm:$0xff]  }
 0x551   :  { %2725 = vmatpush3.bf16.msra.mxu0 %v2918_v57 }
 0x552   :  { %v1691_v37 = vadd.f32 %v1683_v51, %v3697_v11 }
 0x553   :  { %v1659_v50 = vpop.permute.xlu0 %1658 }
 0x554   :  { %v1682_v10 = vmul.f32 %v1659_v50, %v3890_v15  ;;  %v3928_v49 = vmul.f32 0.70710677, %v1691_v37  ;;  %v2919_v15 = vld [vmem:[#allocation8 + $0x1b0] sm:$0xff]  }
 0x555   :  { %v1663_v52 = vpop.permute.xlu1 %1662  ;;  %2726 = vmatprep.subr.bf16.mxu0 %v2919_v15 }
 0x556   :  { %v1690_v0 = vadd.f32 %v1682_v10, %v3699_v12  ;;  %v1684_v18 = vmul.f32 %v1663_v52, %v3896_v61  ;;  %v1795_v25 = vrot.slane %v3928_v49, 2  ;;  %v1767_v39 = vrot.slane %v3928_v49, 1 }
 0x557   :  { %v1665_v16 = vpop.permute.xlu0 %1664  ;;  %v1735_v33 = vrot.slane %v3928_v49, 7 }
 0x558   :  { %v3930_v60 = vmul.f32 0.70710677, %v1690_v0  ;;  %v1692_v41 = vadd.f32 %v1684_v18, %v3702_v5  ;;  %v2920_v5 = vld [vmem:[#allocation8 + $0x170] sm:$0xff]   ;;  %v1685_v19 = vmul.f32 %v1665_v16, %v3899_v38 }
 0x559   :  { %2727 = vmatpush3.bf16.msra.mxu0 %v2920_v5 }
 0x55a   :  { %v3933_v11 = vmul.f32 0.70710677, %v1692_v41  ;;  %v1794_v12 = vrot.slane %v3930_v60, 2  ;;  %v1766_v61 = vrot.slane %v3930_v60, 1  ;;  %2728 = vmatprep.subr.bf16.mxu0 %v2921_v22  ;;  %v1693_v20 = vadd.f32 %v1685_v19, %v3732_v34 }
 0x55b   :  { %v1734_v52 = vrot.slane %v3930_v60, 7  ;;  %v1706_v7 = vrot.slane %v3930_v60, 6 }
 0x55c   :  { %v1796_v26 = vrot.slane %v3933_v11, 2  ;;  %v1768_v23 = vrot.slane %v3933_v11, 1  ;;  %v1808_v44 = vsel %vm612_vm1, %v1794_v12, %v1795_v25  ;;  %v1780_v48 = vsel %vm567_vm2, %v1766_v61, %v1767_v39 }
 0x55d   :  { %2729 = vmatpush3.bf16.msra.mxu0 %v2922_v24  ;;  %v3963_v50 = vmul.f32 0.70710677, %v1693_v20  ;;  %v1736_v34 = vrot.slane %v3933_v11, 7 }
 0x55e   :  { %v1807_v40 = vsel %vm612_vm1, %v1795_v25, %v1796_v26  ;;  %v1779_v9 = vsel %vm567_vm2, %v1767_v39, %v1768_v23 }
 0x55f   :  { %v1811_v36 = vsel %vm450_vm4, %v1807_v40, 0.0  ;;  %v1783_v32 = vsel %vm418_vm5, %v1779_v9, 0.0  ;;  %v1669_v42 = vpop.permute.xlu0 %1668  ;;  %v1737_v1 = vrot.slane %v3963_v50, 7  ;;  %v1747_v39 = vsel %vm518_vm3, %v1735_v33, %v1736_v34 }
 0x560   :  { %v1818_v56 = vpack.c.bf16 %v1811_v36, %v1808_v44  ;;  %v1790_v55 = vpack.c.bf16 %v1783_v32, %v1780_v48  ;;  %v1687_v29 = vmul.f32 %v1669_v42, %v3904_v62  ;;  %v1797_v62 = vrot.slane %v3963_v50, 2 }
 0x561   :  { %v1746_v40 = vsel %vm518_vm3, %v1736_v34, %v1737_v1  ;;  %v1752_v59 = vsel %vm379_vm7, %v1747_v39, 0.0  ;;  %vm4230_vm4 = vcmp.ge.s32.totalorder %v3438_v3, 0  ;;  %vm4231_vm5 = vcmp.lt.s32.totalorder %v3428_v63, 16 }
 0x562   :  { %2822 = vmatprep.mubr.msk.bf16.mxu1 %vm673_vm6, %v1818_v56  ;;  %1838 = vrot.lane.b32.xlu0 %v1790_v55, %s3218_s11  ;;  %v1695_v37 = vadd.f32 %v1687_v29, %v3747_v58  ;;  %v1806_v5 = vsel %vm612_vm1, %v1796_v26, %v1797_v62  ;;  %vm4232_vm7 = vcmp.lt.s32.totalorder %v3434_v2, 16 }
 0x564   :  { %v3978_v30 = vmul.f32 0.70710677, %v1695_v37 }
 0x566   :  { %v1799_v48 = vrot.slane %v3978_v30, 2  ;;  %v1771_v26 = vrot.slane %v3978_v30, 1  ;;  %v1739_v56 = vrot.slane %v3978_v30, 7  ;;  %v1711_v27 = vrot.slane %v3978_v30, 6 }
 0x567   :  { %v1673_v43 = vpop.permute.xlu1 %1672 }
 0x568   :  { %v1689_v51 = vmul.f32 %v1673_v43, %v3911_v45  ;;  %v1769_v45 = vrot.slane %v3963_v50, 1 }
 0x56a   :  { %v1697_v38 = vadd.f32 %v1689_v51, %v3737_v17  ;;  %v1778_v16 = vsel %vm567_vm2, %v1768_v23, %v1769_v45  ;;  %v1759_v51 = vpack.c.bf16 %v1746_v40, %v1752_v59 }
 0x56b   :  { %v1667_v10 = vpop.permute.xlu1 %1666 }
 0x56c   :  { %v3968_v0 = vmul.f32 0.70710677, %v1697_v38  ;;  %v1686_v18 = vmul.f32 %v1667_v10, %v3902_v6  ;;  %v1748_v6 = vsel %vm518_vm3, %v1734_v52, %v1735_v33 }
 0x56e   :  { %v1694_v17 = vadd.f32 %v1686_v18, %v3751_v35  ;;  %v1741_v58 = vrot.slane %v3968_v0, 7  ;;  %v1801_v19 = vrot.slane %v3968_v0, 2  ;;  %v1773_v24 = vrot.slane %v3968_v0, 1 }
 0x56f   :  { %v1671_v41 = vpop.permute.xlu1 %1670 }
 0x570   :  { %v3982_v57 = vmul.f32 0.70710677, %v1694_v17  ;;  %v1688_v15 = vmul.f32 %v1671_v41, %v3907_v13  ;;  %v1749_v25 = vsel %vm518_vm3, %v1741_v58, %v1734_v52  ;;  %v1809_v3 = vsel %vm612_vm1, %v1801_v19, %v1794_v12 }
 0x571   :  { %v1750_v35 = vsel %vm377_vm10, %v1749_v25, 0.0  ;;  %v1781_v17 = vsel %vm567_vm2, %v1773_v24, %v1766_v61 }
 0x572   :  { %v1798_v13 = vrot.slane %v3982_v57, 2  ;;  %v1696_v9 = vadd.f32 %v1688_v15, %v3774_v28  ;;  %v1758_v44 = vpack.c.bf16 %v1748_v6, %v1750_v35  ;;  %v1770_v36 = vrot.slane %v3982_v57, 1 }
 0x573   :  { %v1738_v32 = vrot.slane %v3982_v57, 7 }
 0x574   :  { %v4005_v23 = vmul.f32 0.70710677, %v1696_v9  ;;  %1826 = vrot.lane.b32.xlu1 %v1758_v44, %s3218_s11  ;;  %v1805_v22 = vsel %vm612_vm1, %v1797_v62, %v1798_v13  ;;  %v1777_v28 = vsel %vm567_vm2, %v1769_v45, %v1770_v36  ;;  %v1804_v18 = vsel %vm612_vm1, %v1798_v13, %v1799_v48 }
 0x575   :  { %v1813_v47 = vsel %vm452_vm9, %v1805_v22, 0.0  ;;  %v1785_v55 = vsel %vm420_vm8, %v1777_v28, 0.0  ;;  %v1745_v38 = vsel %vm518_vm3, %v1737_v1, %v1738_v32  ;;  %v1744_v10 = vsel %vm518_vm3, %v1738_v32, %v1739_v56  ;;  %vm4237_vm9 = vmmov %vm4229_vm12 }
 0x576   :  { %v1819_v42 = vpack.c.bf16 %v1813_v47, %v1806_v5  ;;  %v1791_v20 = vpack.c.bf16 %v1785_v55, %v1778_v16  ;;  %v1800_v29 = vrot.slane %v4005_v23, 2  ;;  %v1772_v43 = vrot.slane %v4005_v23, 1 }
 0x577   :  { %v1740_v54 = vrot.slane %v4005_v23, 7  ;;  %v1754_v52 = vsel %vm4230_vm4, %v1745_v38, 0.0  ;;  %v1776_v62 = vsel %vm567_vm2, %v1770_v36, %v1771_v26  ;;  %vm4233_vm8 = vcmp.ge.s32.totalorder %v3452_v8, 0 }
 0x578   :  { %2823 = vmatmul.mubr.msk.bf16.vlgmr.msra.gmra.mrb[24].mxu1 %vm673_vm6, %v1819_v42  ;;  %1840 = vrot.lane.b32.xlu0 %v1791_v20, %s3218_s11  ;;  %v1803_v53 = vsel %vm612_vm1, %v1799_v48, %v1800_v29  ;;  %v1775_v37 = vsel %vm567_vm2, %v1771_v26, %v1772_v43  ;;  %v1760_v63 = vpack.c.bf16 %v1744_v10, %v1754_v52  ;;  %v1707_v13 = vrot.slane %v3928_v49, 6 }
 0x579   :  { %1828 = vrot.lane.b32.xlu1 %v1759_v51, %s3218_s11  ;;  %v1815_v34 = vsel %vm4231_vm5, %v1803_v53, 0.0  ;;  %v1787_v33 = vsel %vm4232_vm7, %v1775_v37, 0.0  ;;  %v1802_v41 = vsel %vm612_vm1, %v1800_v29, %v1801_v19  ;;  %v1774_v2 = vsel %vm567_vm2, %v1772_v43, %v1773_v24  ;;  %vm4235_vm2 = vmmov %vm4227_vm13 }
 0x57a   :  { %v1820_v45 = vpack.c.bf16 %v1815_v34, %v1804_v18  ;;  %v1792_v1 = vpack.c.bf16 %v1787_v33, %v1776_v62  ;;  %v1743_v6 = vsel %vm518_vm3, %v1739_v56, %v1740_v54  ;;  %v1742_v12 = vsel %vm518_vm3, %v1740_v54, %v1741_v58  ;;  %vm4236_vm3 = vmmov %vm4228_vm11 }
 0x57b   :  { %v1756_v61 = vsel %vm4233_vm8, %v1743_v6, 0.0  ;;  %vm4234_vm1 = vcmp.lt.s32.totalorder %v3440_v4, 16  ;;  %v1789_v25 = vsel %vm4235_vm2, %v1781_v17, 0.0  ;;  %v1762_v8 = vpack.c.bf16 %v3928_v49, %v3930_v60 }
 0x57c   :  { %2826 = vmatprep.mubr.msk.bf16.mxu1 %vm673_vm6, %v1820_v45  ;;  %1842 = vrot.lane.b32.xlu0 %v1792_v1, %s3218_s11  ;;  %v1817_v15 = vsel %vm4234_vm1, %v1809_v3, 0.0  ;;  %v1793_v35 = vpack.c.bf16 %v1789_v25, %v1774_v2  ;;  %v1761_v5 = vpack.c.bf16 %v1742_v12, %v1756_v61  ;;  %v1713_v4 = vrot.slane %v3968_v0, 6 }
 0x57d   :  { %1830 = vrot.lane.b32.xlu1 %v1760_v63, %s3218_s11  ;;  %v1821_v39 = vpack.c.bf16 %v1817_v15, %v1802_v41  ;;  %v1708_v44 = vrot.slane %v3933_v11, 6  ;;  %v1720_v36 = vsel %vm473_vm15, %v1706_v7, %v1707_v13  ;;  %v1709_v26 = vrot.slane %v3963_v50, 6 }
 0x57e   :  { %v1721_v40 = vsel %vm473_vm15, %v1713_v4, %v1706_v7  ;;  %v1763_v28 = vpack.c.bf16 %v3963_v50, %v3933_v11  ;;  %v1710_v19 = vrot.slane %v3982_v57, 6  ;;  %v1764_v20 = vpack.c.bf16 %v3978_v30, %v3982_v57 }
 0x57f   :  { %v1722_v9 = vsel %vm4236_vm3, %v1721_v40, 0.0  ;;  %v1719_v22 = vsel %vm473_vm15, %v1707_v13, %v1708_v44  ;;  %v1718_v56 = vsel %vm473_vm15, %v1708_v44, %v1709_v26  ;;  %v1712_v37 = vrot.slane %v4005_v23, 6 }
 0x580   :  { %2827 = vmatmul.mubr.msk.bf16.gmra.mrb[28].mxu1 %vm673_vm6, %v1821_v39  ;;  %1844 = vrot.lane.b32.xlu0 %v1793_v35, %s3218_s11  ;;  %v1730_v59 = vpack.c.bf16 %v1720_v36, %v1722_v9  ;;  %v1724_v47 = vsel %vm4237_vm9, %v1719_v22, 0.0  ;;  %v1717_v38 = vsel %vm473_vm15, %v1709_v26, %v1710_v19  ;;  %v1716_v54 = vsel %vm473_vm15, %v1710_v19, %v1711_v27  ;;  %v2570_v35 = vld [vmem:[#allocation10 + $0x2] ss:$0 sm:$0xff] }
 0x581   :  { %1832 = vrot.lane.b32.xlu1 %v1761_v5, %s3218_s11  ;;  %v1731_v42 = vpack.c.bf16 %v1718_v56, %v1724_v47  ;;  %v1726_v53 = vsel %vm349_vm0, %v1717_v38, 0.0  ;;  %v1765_v34 = vpack.c.bf16 %v3968_v0, %v4005_v23  ;;  %v1715_v33 = vsel %vm473_vm15, %v1711_v27, %v1712_v37 }
 0x582   :  { %v1732_v18 = vpack.c.bf16 %v1716_v54, %v1726_v53  ;;  %v1714_v46 = vsel %vm473_vm15, %v1712_v37, %v1713_v4  ;;  %v1728_v1 = vsel %vm351_vm14, %v1715_v33, 0.0  ;;  %vm4238_vm0 = vcmask 261120  }
 0x583   :  { %v1733_v17 = vpack.c.bf16 %v1714_v46, %v1728_v1  ;;  %vm4239_vm10 = vmmov %vm4238_vm0 }
 0x584   :  { %vm4240_vm13 = vmmov %vm4238_vm0 }
 0x585   :  { %vm4241_vm14 = vmmov %vm4238_vm0 }
 0x586   :  { %vm4242_vm15 = vmmov %vm4238_vm0 }
 0x587   :  { %vm4243_vm11 = vmmov %vm4238_vm0 }
 0x588   :  { %vm4244_vm12 = vmmov %vm4238_vm0 }
 0x589   :  { %vm4245_vm4 = vmmov %vm4238_vm0 }
 0x5d4   :  { %v1839_v58 = vpop.permute.xlu0 %1838 }
 0x5d5   :  { %v1864_v16 = vsel %vm673_vm6, %v1762_v8, %v1839_v58 }
 0x5d6   :  { %2091 = vmatprep.mubr.bf16.mxu0 %v1864_v16 }
 0x5e6   :  { %v1827_v48 = vpop.permute.xlu1 %1826 }
 0x5e7   :  { %v1848_v32 = vsel %vm673_vm6, %v1730_v59, %v1827_v48 }
 0x5e8   :  { %2092 = vmatmul.mubr.bf16.vlgmr.msra.gmra.mrb[32].mxu0 %v1848_v32 }
 0x5ea   :  { %v1841_v21 = vpop.permute.xlu0 %1840 }
 0x5eb   :  { %v1868_v55 = vsel %vm673_vm6, %v1763_v28, %v1841_v21  ;;  %v1829_v24 = vpop.permute.xlu1 %1828 }
 0x5ec   :  { %2099 = vmatprep.mubr.bf16.mxu0 %v1868_v55  ;;  %v1852_v43 = vsel %vm673_vm6, %v1731_v42, %v1829_v24 }
 0x5ee   :  { %v1843_v29 = vpop.permute.xlu0 %1842 }
 0x5ef   :  { %v1872_v51 = vsel %vm673_vm6, %v1764_v20, %v1843_v29  ;;  %v1831_v10 = vpop.permute.xlu1 %1830 }
 0x5f0   :  { %2100 = vmatmul.mubr.bf16.gmra.mrb[36].mxu0 %v1852_v43  ;;  %v1856_v62 = vsel %vm673_vm6, %v1732_v18, %v1831_v10 }
 0x5f1   :  { %2107 = vmatprep.mubr.bf16.mxu0 %v1872_v51 }
 0x5f2   :  { %v1845_v52 = vpop.permute.xlu0 %1844 }
 0x5f3   :  { %v1876_v45 = vsel %vm673_vm6, %v1765_v34, %v1845_v52  ;;  %v1833_v3 = vpop.permute.xlu1 %1832 }
 0x5f4   :  { %v1860_v63 = vsel %vm673_vm6, %v1733_v17, %v1833_v3 }
 0x5f8   :  { %2108 = vmatmul.mubr.bf16.gmra.mrb[40].mxu0 %v1856_v62 }
 0x5f9   :  { %2115 = vmatprep.mubr.bf16.mxu0 %v1876_v45 }
 0x600   :  { %2116 = vmatmul.mubr.bf16.gmra.mrb[44].mxu0 %v1860_v63 }
 0x64b   :  { %v2824_v41 = vpop.f32.mrb[24].mxu1 }
 0x64c   :  { %v2158_v2 = vpop.f32.mrb[25].mxu1 }
 0x64d   :  { %v2825_v6 = vpop.f32.mrb[26].mxu1 }
 0x64e   :  { %v2161_v12 = vpop.f32.mrb[27].mxu1 }
 0x653   :  { %v4119_v61 = vpop.f32.mrb[28].mxu1 }
 0x654   :  { %v2174_v15 = vpop.f32.mrb[29].mxu1 }
 0x655   :  { %v4121_v25 = vpop.f32.mrb[30].mxu1 }
 0x656   :  { %v2177_v39 = vpop.f32.mrb[31].mxu1 }
 0x6bb   :  { %v2730_v31 = vpop.f32.mrb[32].mxu0 }
 0x6bc   :  { %v2731_v5 = vpop.f32.mrb[33].mxu0 }
 0x6bd   :  { %v2732_v14 = vadd.f32 %v2731_v5, %v2730_v31  ;;  %v2733_v8 = vpop.f32.mrb[34].mxu0 }
 0x6be   :  { %v2734_v58 = vpop.f32.mrb[35].mxu0 }
 0x6bf   :  { %v2094_v16 = vadd.f32 %v2732_v14, %v2570_v35  ;;  %v2735_v4 = vadd.f32 %v2734_v58, %v2733_v8 }
 0x6c1   :  { %v4123_v7 = vadd.f32 %v2158_v2, %v2094_v16  ;;  %v2097_v40 = vadd.f32 %v2735_v4, %v2570_v35 }
 0x6c3   :  { %v2595_v13 = vmul.f32 -1.442695, %v4123_v7  ;;  %v4126_v9 = vadd.f32 %v2161_v12, %v2097_v40  ;;  %v2736_v44 = vpop.f32.mrb[36].mxu0  ;;  %v2924_v12 = vld [vmem:[#allocation11 + $0x8] sm:$0xff]   ;;  %v2925_v40 = vld [vmem:[#allocation11 + $0x10] sm:$0xff]  }
 0x6c4   :  { %v2737_v36 = vpop.f32.mrb[37].mxu0 }
 0x6c5   :  { %2991 = vpow2.f32 %v2595_v13  ;;  %v2596_v59 = vmul.f32 -1.442695, %v4126_v9  ;;  %v2738_v48 = vadd.f32 %v2737_v36, %v2736_v44  ;;  %v2739_v26 = vpop.f32.mrb[38].mxu0  ;;  %v2926_v13 = vld [vmem:[#allocation11 + $0x18] sm:$0xff]  }
 0x6c6   :  { %v2740_v32 = vpop.f32.mrb[39].mxu0 }
 0x6c7   :  { %2993 = vpow2.f32 %v2596_v59  ;;  %v2102_v22 = vadd.f32 %v2738_v48, %v2570_v35  ;;  %v2741_v28 = vadd.f32 %v2740_v32, %v2739_v26 }
 0x6c9   :  { %v4129_v21 = vadd.f32 %v2824_v41, %v2102_v22  ;;  %v2105_v56 = vadd.f32 %v2741_v28, %v2570_v35 }
 0x6cb   :  { %v2597_v47 = vmul.f32 -1.442695, %v4129_v21  ;;  %v4132_v55 = vadd.f32 %v2825_v6, %v2105_v56  ;;  %v2742_v19 = vpop.f32.mrb[40].mxu0  ;;  %v2923_v6 = vld [vmem:[#allocation11] sm:$0xff]  }
 0x6cc   :  { %v2743_v24 = vpop.f32.mrb[41].mxu0  ;;  %2830 = vmatprep.subr.bf16.mxu1 %v2923_v6 }
 0x6cd   :  { %2995 = vpow2.f32 %v2597_v47  ;;  %v2598_v42 = vmul.f32 -1.442695, %v4132_v55  ;;  %v2744_v20 = vadd.f32 %v2743_v24, %v2742_v19  ;;  %v2745_v29 = vpop.f32.mrb[42].mxu0  ;;  %2831 = vmatpush3.bf16.msra.mxu1 %v2923_v6  ;;  %v3023_v19 = vld [vmem:[#allocation2] sm:$0xff] }
 0x6ce   :  { %v2746_v43 = vpop.f32.mrb[43].mxu0  ;;  %2832 = vmatprep.subr.bf16.mxu1 %v2924_v12  ;;  %v2413_v24 = vmul.f32 0.70710677, %v3023_v19 }
 0x6cf   :  { %v2992_v51 = vpop.eup %2991  ;;  %2997 = vpow2.f32 %v2598_v42  ;;  %v2110_v38 = vadd.f32 %v2744_v20, %v2570_v35  ;;  %v2747_v27 = vadd.f32 %v2746_v43, %v2745_v29  ;;  %v3024_v20 = vld [vmem:[#allocation2 + $0x8] sm:$0xff]  ;;  %v3025_v43 = vld [vmem:[#allocation2 + $0x10] sm:$0xff] }
 0x6d0   :  { %v2213_v54 = vadd.f32 1.0, %v2992_v51  ;;  %v2414_v29 = vmul.f32 0.70710677, %v3024_v20  ;;  %v2415_v51 = vmul.f32 0.70710677, %v3025_v43 }
 0x6d1   :  { %v2994_v53 = vpop.eup %2993  ;;  %v4135_v37 = vadd.f32 %v2174_v15, %v2110_v38  ;;  %v2113_v10 = vadd.f32 %v2747_v27, %v2570_v35  ;;  %2833 = vmatpush3.bf16.msra.mxu1 %v2924_v12  ;;  %v3026_v38 = vld [vmem:[#allocation2 + $0x18] sm:$0xff] }
 0x6d2   :  { %2999 = vrcp.f32 %v2213_v54  ;;  %v2214_v52 = vadd.f32 1.0, %v2994_v53  ;;  %2834 = vmatprep.subr.bf16.mxu1 %v2925_v40  ;;  %v2416_v27 = vmul.f32 0.70710677, %v3026_v38  ;;  %v3027_v54 = vld [vmem:[#allocation2 + $0x20] sm:$0xff] }
 0x6d3   :  { %v2599_v18 = vmul.f32 -1.442695, %v4135_v37  ;;  %v4138_v34 = vadd.f32 %v2177_v39, %v2113_v10  ;;  %v2748_v62 = vpop.f32.mrb[44].mxu0  ;;  %v2417_v53 = vmul.f32 0.70710677, %v3027_v54  ;;  %v3028_v10 = vld [vmem:[#allocation2 + $0x28] sm:$0xff] }
 0x6d4   :  { %3001 = vrcp.f32 %v2214_v52  ;;  %v2749_v33 = vpop.f32.mrb[45].mxu0  ;;  %v2418_v52 = vmul.f32 0.70710677, %v3028_v10 }
 0x6d5   :  { %3003 = vpow2.f32 %v2599_v18  ;;  %v2600_v45 = vmul.f32 -1.442695, %v4138_v34  ;;  %v2750_v46 = vadd.f32 %v2749_v33, %v2748_v62  ;;  %v2751_v1 = vpop.f32.mrb[46].mxu0  ;;  %2835 = vmatpush3.bf16.msra.mxu1 %v2925_v40  ;;  %v3029_v18 = vld [vmem:[#allocation2 + $0x30] sm:$0xff]  ;;  %v3030_v33 = vld [vmem:[#allocation2 + $0x38] sm:$0xff] }
 0x6d6   :  { %v2752_v3 = vpop.f32.mrb[47].mxu0  ;;  %2836 = vmatprep.subr.bf16.mxu1 %v2926_v13  ;;  %v2419_v62 = vmul.f32 0.70710677, %v3029_v18 }
 0x6d7   :  { %v2996_v17 = vpop.eup %2995  ;;  %3005 = vpow2.f32 %v2600_v45  ;;  %v2118_v63 = vadd.f32 %v2750_v46, %v2570_v35  ;;  %v2753_v41 = vadd.f32 %v2752_v3, %v2751_v1  ;;  %v2420_v45 = vmul.f32 0.70710677, %v3030_v33 }
 0x6d8   :  { %v2215_v2 = vadd.f32 1.0, %v2996_v17 }
 0x6d9   :  { %v2998_v15 = vpop.eup %2997  ;;  %v4142_v39 = vadd.f32 %v4119_v61, %v2118_v63  ;;  %v2121_v31 = vadd.f32 %v2753_v41, %v2570_v35  ;;  %2837 = vmatpush3.bf16.msra.mxu1 %v2926_v13 }
 0x6da   :  { %3007 = vrcp.f32 %v2215_v2  ;;  %v2216_v5 = vadd.f32 1.0, %v2998_v15 }
 0x6db   :  { %v2601_v14 = vmul.f32 -1.442695, %v4142_v39  ;;  %v4146_v8 = vadd.f32 %v4121_v25, %v2121_v31 }
 0x6dc   :  { %v3000_v58 = vpop.eup %2999  ;;  %3009 = vrcp.f32 %v2216_v5 }
 0x6dd   :  { %3011 = vpow2.f32 %v2601_v14  ;;  %v2602_v16 = vmul.f32 -1.442695, %v4146_v8  ;;  %2245 = vrot.lane.b32.xlu0 %v3000_v58, %s3218_s11 }
 0x6de   :  { %v3002_v61 = vpop.eup %3001 }
 0x6df   :  { %v3004_v4 = vpop.eup %3003  ;;  %3013 = vpow2.f32 %v2602_v16  ;;  %2247 = vrot.lane.b32.xlu1 %v3002_v61, %s3218_s11 }
 0x6e0   :  { %v2217_v35 = vadd.f32 1.0, %v3004_v4 }
 0x6e1   :  { %v3006_v25 = vpop.eup %3005 }
 0x6e2   :  { %3015 = vrcp.f32 %v2217_v35  ;;  %v2218_v44 = vadd.f32 1.0, %v3006_v25 }
 0x6e4   :  { %v3008_v36 = vpop.eup %3007  ;;  %3017 = vrcp.f32 %v2218_v44 }
 0x6e5   :  { %2249 = vrot.lane.b32.xlu0 %v3008_v36, %s3218_s11 }
 0x6e6   :  { %v3010_v59 = vpop.eup %3009 }
 0x6e7   :  { %v3012_v48 = vpop.eup %3011  ;;  %2251 = vrot.lane.b32.xlu1 %v3010_v59, %s3218_s11 }
 0x6e8   :  { %v2219_v26 = vadd.f32 1.0, %v3012_v48 }
 0x6e9   :  { %v3014_v32 = vpop.eup %3013 }
 0x6ea   :  { %3019 = vrcp.f32 %v2219_v26  ;;  %v2220_v22 = vadd.f32 1.0, %v3014_v32 }
 0x6ec   :  { %v3016_v28 = vpop.eup %3015  ;;  %3021 = vrcp.f32 %v2220_v22  ;;  %v2603_v22 = vld [vmem:[#allocation13] ss:$0 sm:$0xff] }
 0x6ed   :  { %2253 = vrot.lane.b32.xlu0 %v3016_v28, %s3218_s11 }
 0x6ee   :  { %v3018_v56 = vpop.eup %3017 }
 0x6ef   :  { %2255 = vrot.lane.b32.xlu1 %v3018_v56, %s3218_s11 }
 0x6f4   :  { %v3020_v47 = vpop.eup %3019 }
 0x6f5   :  { %2257 = vrot.lane.b32.xlu0 %v3020_v47, %s3218_s11 }
 0x6f6   :  { %v3022_v42 = vpop.eup %3021 }
 0x6f7   :  { %2259 = vrot.lane.b32.xlu1 %v3022_v42, %s3218_s11  ;;  %s3231_s11 = smov [#allocation14]  }
 0x6f8   :  { %s2482_s20 = sshll.u32 %s3231_s11, 4  ;;  %s2483_s20 = int_to_ptr.vmem [resolvable:$true] %s2482_s20 }
 0x6f9   :  { %2429 = vrot.lane.b32.xlu0 %v2413_v24, %s3230_s6  ;;  %s3185_s21 = scalar_lea.vmem %s2483_s20, 1024  ;;  %p3190_p1 = scmp.lt.s32.totalorder %s2483_s20, %s2483_s20 }
 0x6fa   :  { %p3186_p0 = scmp.ne.s32.totalorder %s2483_s20, %s3185_s21  ;;  %p3191_p2 = scmp.lt.s32.totalorder %s3185_s21, %s3185_s21 }
 0x6fb   :  { %2431 = vrot.lane.b32.xlu1 %v2414_v29, %s3230_s6 }
 0x6fc   :  { %p3192_p3 = por %p3191_p2, %p3190_p1 }
 0x6fd   :  { %2433 = vrot.lane.b32.xlu0 %v2415_v51, %s3230_s6 }
 0x6fe   :  { %p3193_p4 = pnand %p3192_p3, %p3186_p0 }
 0x6ff   :  { %2435 = vrot.lane.b32.xlu1 %v2416_v27, %s3230_s6 }
 0x701   :  { %2437 = vrot.lane.b32.xlu0 %v2417_v53, %s3230_s6 }
 0x703   :  { %2439 = vrot.lane.b32.xlu1 %v2418_v52, %s3230_s6 }
 0x705   :  { %2441 = vrot.lane.b32.xlu0 %v2419_v62, %s3230_s6 }
 0x707   :  { %2443 = vrot.lane.b32.xlu1 %v2420_v45, %s3230_s6 }
 0x74f   :  { %v2246_v46 = vpop.permute.xlu0 %2245 }
 0x750   :  { %v2269_v1 = vmul.f32 %v2246_v46, %v4123_v7 }
 0x751   :  { %v2248_v3 = vpop.permute.xlu1 %2247 }
 0x752   :  { %v2277_v17 = vadd.f32 %v2269_v1, %v3930_v60  ;;  %v2270_v63 = vmul.f32 %v2248_v3, %v4126_v9 }
 0x754   :  { %v2278_v41 = vadd.f32 %v2270_v63, %v3928_v49  ;;  %v2285_v2 = vmul.f32 0.70710677, %v2277_v17 }
 0x756   :  { %v2286_v6 = vmul.f32 0.70710677, %v2278_v41 }
 0x757   :  { %v2250_v12 = vpop.permute.xlu0 %2249 }
 0x758   :  { %v2293_v15 = vpack.c.bf16 %v2286_v6, %v2285_v2  ;;  %v2271_v31 = vmul.f32 %v2250_v12, %v4129_v21 }
 0x759   :  { %v2252_v5 = vpop.permute.xlu1 %2251 }
 0x75a   :  { %v2279_v14 = vadd.f32 %v2271_v31, %v3933_v11  ;;  %v2272_v58 = vmul.f32 %v2252_v5, %v4132_v55  ;;  %2838 = vmatprep.mubr.msk.bf16.mxu1 %vm673_vm6, %v2293_v15 }
 0x75c   :  { %v2280_v7 = vadd.f32 %v2272_v58, %v3963_v50  ;;  %v2287_v60 = vmul.f32 0.70710677, %v2279_v14 }
 0x75e   :  { %v2288_v16 = vmul.f32 0.70710677, %v2280_v7 }
 0x75f   :  { %v2254_v9 = vpop.permute.xlu0 %2253 }
 0x760   :  { %v2294_v61 = vpack.c.bf16 %v2288_v16, %v2287_v60  ;;  %v2273_v49 = vmul.f32 %v2254_v9, %v4135_v37 }
 0x761   :  { %v2256_v4 = vpop.permute.xlu1 %2255 }
 0x762   :  { %v2281_v35 = vadd.f32 %v2273_v49, %v3982_v57  ;;  %v2274_v21 = vmul.f32 %v2256_v4, %v4138_v34  ;;  %2839 = vmatmul.mubr.msk.bf16.vlgmr.msra.gmra.mrb[32].mxu1 %vm673_vm6, %v2294_v61 }
 0x764   :  { %v2282_v11 = vadd.f32 %v2274_v21, %v3978_v30  ;;  %v2289_v55 = vmul.f32 0.70710677, %v2281_v35 }
 0x766   :  { %v2290_v40 = vmul.f32 0.70710677, %v2282_v11 }
 0x767   :  { %v2258_v13 = vpop.permute.xlu0 %2257 }
 0x768   :  { %v2295_v25 = vpack.c.bf16 %v2290_v40, %v2289_v55  ;;  %v2275_v50 = vmul.f32 %v2258_v13, %v4142_v39 }
 0x769   :  { %v2260_v44 = vpop.permute.xlu1 %2259 }
 0x76a   :  { %v2283_v36 = vadd.f32 %v2275_v50, %v4005_v23  ;;  %v2276_v37 = vmul.f32 %v2260_v44, %v4146_v8  ;;  %2842 = vmatprep.mubr.msk.bf16.mxu1 %vm673_vm6, %v2295_v25 }
 0x76b   :  { %v2430_v30 = vpop.permute.xlu0 %2429 }
 0x76c   :  { %v2284_v57 = vadd.f32 %v2276_v37, %v3968_v0  ;;  %v2291_v34 = vmul.f32 0.70710677, %v2283_v36  ;;  %v2453_v23 = vsel %vm4239_vm10, 0.0, %v2430_v30 }
 0x76d   :  { %v2432_v26 = vpop.permute.xlu1 %2431 }
 0x76e   :  { %v2292_v59 = vmul.f32 0.70710677, %v2284_v57  ;;  %v2454_v42 = vsel %vm4241_vm14, 0.0, %v2432_v26 }
 0x76f   :  { %v2434_v32 = vpop.permute.xlu0 %2433 }
 0x770   :  { %v2296_v48 = vpack.c.bf16 %v2292_v59, %v2291_v34  ;;  %v2455_v56 = vsel %vm4238_vm0, 0.0, %v2434_v32 }
 0x771   :  { %v2436_v28 = vpop.permute.xlu1 %2435 }
 0x772   :  { %2843 = vmatmul.mubr.msk.bf16.gmra.mrb[36].mxu1 %vm673_vm6, %v2296_v48  ;;  %v2456_v0 = vsel %vm4240_vm13, 0.0, %v2436_v28 }
 0x773   :  { %v2438_v53 = vpop.permute.xlu0 %2437 }
 0x774   :  { %v2457_v63 = vsel %vm4244_vm12, 0.0, %v2438_v53 }
 0x775   :  { %v2440_v10 = vpop.permute.xlu1 %2439 }
 0x776   :  { %v2458_v31 = vsel %vm4245_vm4, 0.0, %v2440_v10 }
 0x777   :  { %v2442_v52 = vpop.permute.xlu0 %2441 }
 0x778   :  { %v2459_v33 = vsel %vm4242_vm15, 0.0, %v2442_v52 }
 0x779   :  { %v2444_v18 = vpop.permute.xlu1 %2443 }
 0x77a   :  { %v2460_v17 = vsel %vm4243_vm11, 0.0, %v2444_v18 }
 0x835   :  { %v2840_v39 = vpop.f32.mrb[32].mxu1 }
 0x836   :  { %v2391_v8 = vadd.f32 %v2840_v39, %v2603_v22  ;;  %v2382_v47 = vpop.f32.mrb[33].mxu1 }
 0x837   :  { %v2383_v19 = vadd.f32 %v2603_v22, %v2382_v47  ;;  %v2841_v24 = vpop.f32.mrb[34].mxu1 }
 0x838   :  { %v2463_v20 = vadd.f32 %v2455_v56, %v2391_v8  ;;  %v2394_v29 = vadd.f32 %v2841_v24, %v2603_v22  ;;  %v2385_v43 = vpop.f32.mrb[35].mxu1 }
 0x839   :  { %v2461_v51 = vadd.f32 %v2453_v23, %v2383_v19  ;;  %v2386_v38 = vadd.f32 %v2603_v22, %v2385_v43 }
 0x83a   :  { %2471 = vst.msk [vmem:[#allocation14 + $0x10] sm:$0xff] %vm673_vm6, %v2463_v20  ;;  %v2464_v27 = vadd.f32 %v2456_v0, %v2394_v29 }
 0x83b   :  { %2469 = vst.msk [vmem:[#allocation14] sm:$0xff] %vm673_vm6, %v2461_v51  ;;  %v2462_v54 = vadd.f32 %v2454_v42, %v2386_v38 }
 0x83c   :  { %2472 = vst.msk [vmem:[#allocation14 + $0x18] sm:$0xff] %vm673_vm6, %v2464_v27 }
 0x83d   :  { %2470 = vst.msk [vmem:[#allocation14 + $0x8] sm:$0xff] %vm673_vm6, %v2462_v54 }
 0x845   :  { %v2844_v62 = vpop.f32.mrb[36].mxu1 }
 0x846   :  { %v2407_v45 = vadd.f32 %v2844_v62, %v2603_v22  ;;  %v2398_v46 = vpop.f32.mrb[37].mxu1 }
 0x847   :  { %v2399_v1 = vadd.f32 %v2603_v22, %v2398_v46  ;;  %v2845_v3 = vpop.f32.mrb[38].mxu1 }
 0x848   :  { %v2467_v41 = vadd.f32 %v2459_v33, %v2407_v45  ;;  %v2410_v2 = vadd.f32 %v2845_v3, %v2603_v22  ;;  %v2401_v6 = vpop.f32.mrb[39].mxu1 }
 0x849   :  { %v2465_v12 = vadd.f32 %v2457_v63, %v2399_v1  ;;  %v2402_v15 = vadd.f32 %v2603_v22, %v2401_v6 }
 0x84a   :  { %2475 = vst.msk [vmem:[#allocation14 + $0x30] sm:$0xff] %vm673_vm6, %v2467_v41  ;;  %v2468_v5 = vadd.f32 %v2460_v17, %v2410_v2 }
 0x84b   :  { %2473 = vst.msk [vmem:[#allocation14 + $0x20] sm:$0xff] %vm673_vm6, %v2465_v12  ;;  %v2466_v14 = vadd.f32 %v2458_v31, %v2402_v15 }
 0x84c   :  { %2476 = vst.msk [vmem:[#allocation14 + $0x38] sm:$0xff] %vm673_vm6, %v2468_v5 }
 0x84d   :  { %2474 = vst.msk [vmem:[#allocation14 + $0x28] sm:$0xff] %vm673_vm6, %v2466_v14 }
 0x84e   :  { %3196 = shalt.err (!%p3193_p4)
}
 0x84f   :  { %s3197_s24 = scalar_lea.hbm %s4215_s7, 1024 }
 0x850   :  { %p3198_p5 = scmp.ne.s32.totalorder %s4215_s7, %s3197_s24  ;;  %p3201_p6 = scmp.lt.u32.totalorder %s3197_s24, %s4215_s7 }
 0x852   :  { %p3203_p7 = pnand %p3201_p6, %p3198_p5 }
 0x854   :  { %3206 = shalt.err (!%p3203_p7)
}
 0x855   :  { %2488 = dma.vmem_to_hbm [thread:$0]  %s2483_s20, 1024, %s4215_s7, [#allocation4], %s3223_s5, %s3223_s5, %s3224_s12  }
 0x856   :  { %3215 = dma.done.wait [#allocation4], 1024  }
 0x857   :  { %3216 = vsyncadd [#allocation4], 4294966272 }
 0x858   :  { %2492 = vsyncpa [#allocation3], 1 }
 0x859   :  { %2493 = vsyncpa [#allocation6], 1 }
 0x85a   :  { %2494 = vsyncpa [#allocation9], 1 }
 0x85b   :  { %2495 = vsyncpa [#allocation12], 1 }
 0x85c   :  { %2496 = vsyncpa [#allocation4], 1 }

</bundles_post_ra>
